<compile_context>
chip_gen: v6e
topology: v6e:2x2x1
jax: 0.10.0
libtpu: 0.0.40
codegen_flags: <defaults>
</compile_context>

<pallas_src>
import functools
import math

import jax
import jax.numpy as jnp
from jax.experimental import pallas as pl
from jax.experimental.pallas import tpu as pltpu


# ----------------------------------------------------------------------------
# Fused per-layer kernel
# ----------------------------------------------------------------------------

def _mba_layer_kernel(*refs, nhead, eps, add_pe):
    """One MultiBranchAttention layer + residual + outer LayerNorm.

    Grid = (batch, branch).  x block: (1, S, D) resident across branches.
    acc_ref accumulates sum_b branch_out_b @ mb_w_b; output written on the
    last branch step.  When add_pe is True the positional encoding is added
    to the layer input inside the kernel (first layer only).
    """
    if add_pe:
        (x_ref, pe_ref, inw_ref, inb_ref, outw_ref, outb_ref,
         l1w_ref, l1b_ref, l2w_ref, l2b_ref,
         n1g_ref, n1b_ref, n2g_ref, n2b_ref,
         mbw_ref, mbb_ref, lng_ref, lnb_ref,
         o_ref, acc_ref) = refs
    else:
        (x_ref, inw_ref, inb_ref, outw_ref, outb_ref,
         l1w_ref, l1b_ref, l2w_ref, l2b_ref,
         n1g_ref, n1b_ref, n2g_ref, n2b_ref,
         mbw_ref, mbb_ref, lng_ref, lnb_ref,
         o_ref, acc_ref) = refs
        pe_ref = None

    br = pl.program_id(1)
    nb = pl.num_programs(1)

    x = x_ref[0]                               # (S, D) float32
    if add_pe:
        x = x + pe_ref[...]                    # fused positional encoding
    S, D = x.shape
    dh = D // nhead
    scale = 1.0 / math.sqrt(dh)

    def matmul(a, w):                          # bf16 MXU matmul, f32 accumulate
        return jnp.dot(a.astype(jnp.bfloat16), w,
                       preferred_element_type=jnp.float32)

    def layernorm(z, g, b):                    # f32 VPU/XLU math
        mu = jnp.mean(z, axis=-1, keepdims=True)
        zc = z - mu
        var = jnp.mean(zc * zc, axis=-1, keepdims=True)
        return zc * jax.lax.rsqrt(var + eps) * g + b

    # ---------------- self attention ----------------
    qkv = matmul(x, inw_ref[0]) + inb_ref[0]   # (S, 3D) f32
    q = qkv[:, :D] * scale
    k = qkv[:, D:2 * D]
    v = qkv[:, 2 * D:]

    heads = []
    for h in range(nhead):                     # static unroll, in-VMEM slices
        sl = slice(h * dh, (h + 1) * dh)
        qh = q[:, sl].astype(jnp.bfloat16)
        kh = k[:, sl].astype(jnp.bfloat16)
        vh = v[:, sl].astype(jnp.bfloat16)
        # scores = q_h @ k_h^T  (contract last dims, no explicit transpose)
        s = jax.lax.dot_general(qh, kh, (((1,), (1,)), ((), ())),
                                preferred_element_type=jnp.float32)  # (S, S)
        m = jnp.max(s, axis=-1, keepdims=True)
        p = jnp.exp(s - m)
        denom = jnp.sum(p, axis=-1, keepdims=True)
        p = p * pl.reciprocal(denom, approx=True)
        heads.append(jnp.dot(p.astype(jnp.bfloat16), vh,
                             preferred_element_type=jnp.float32))    # (S, dh)
    attn = jnp.concatenate(heads, axis=-1)                           # (S, D)

    attn = matmul(attn, outw_ref[0]) + outb_ref[0]
    x1 = layernorm(x + attn, n1g_ref[0], n1b_ref[0])                 # norm1

    # ---------------- feed forward ----------------
    hdn = jnp.maximum(matmul(x1, l1w_ref[0]) + l1b_ref[0], 0.0)      # (S, dff)
    ff = matmul(hdn, l2w_ref[0]) + l2b_ref[0]
    x2 = layernorm(x1 + ff, n2g_ref[0], n2b_ref[0])                  # branch out

    # ------- accumulate multi-branch projection over the branch axis -------
    part = matmul(x2, mbw_ref[0])                                    # (S, D)

    @pl.when(br == 0)
    def _():
        acc_ref[...] = jnp.zeros_like(acc_ref)

    acc_ref[...] += part

    # ------- finalize: +bias, residual, outer LayerNorm, write output -------
    @pl.when(br == nb - 1)
    def _():
        z = x + acc_ref[...] + mbb_ref[...]
        o_ref[0] = layernorm(z, lng_ref[...], lnb_ref[...]).astype(o_ref.dtype)


def mba_layer_forward(x, lp, ln_g, ln_b, nhead, pe=None, eps=1e-5):
    """x: (B, S, D) f32.  One fused pallas_call for the whole layer.

    If pe is given (shape (S, D)), the positional-encoding add is fused in.
    """
    B, S, D = x.shape
    nb = lp["in_proj_w"].shape[0]
    dff = lp["lin1_w"].shape[2]
    add_pe = pe is not None

    xmap = lambda bb, br: (bb, 0, 0)          # activation / output (per batch)
    wmap = lambda bb, br: (br, 0, 0)          # per-branch weights
    smap = lambda bb, br: (0, 0)              # shared (pe, mb bias, outer LN)

    in_specs = [pl.BlockSpec((1, S, D), xmap)]          # x
    inputs = [x]
    if add_pe:
        in_specs.append(pl.BlockSpec((S, D), smap))     # positional encoding
        inputs.append(pe)
    in_specs += [
        pl.BlockSpec((1, D, 3 * D), wmap),        # in_proj_w
        pl.BlockSpec((1, 1, 3 * D), wmap),        # in_proj_b
        pl.BlockSpec((1, D, D), wmap),            # out_proj_w
        pl.BlockSpec((1, 1, D), wmap),            # out_proj_b
        pl.BlockSpec((1, D, dff), wmap),          # lin1_w
        pl.BlockSpec((1, 1, dff), wmap),          # lin1_b
        pl.BlockSpec((1, dff, D), wmap),          # lin2_w
        pl.BlockSpec((1, 1, D), wmap),            # lin2_b
        pl.BlockSpec((1, 1, D), wmap),            # norm1_g
        pl.BlockSpec((1, 1, D), wmap),            # norm1_b
        pl.BlockSpec((1, 1, D), wmap),            # norm2_g
        pl.BlockSpec((1, 1, D), wmap),            # norm2_b
        pl.BlockSpec((1, D, D), wmap),            # mb_w (per-branch slice)
        pl.BlockSpec((1, D), smap),               # mb_b
        pl.BlockSpec((1, D), smap),               # outer ln_g
        pl.BlockSpec((1, D), smap),               # outer ln_b
    ]
    inputs += [
        lp["in_proj_w"], lp["in_proj_b"], lp["out_proj_w"], lp["out_proj_b"],
        lp["lin1_w"], lp["lin1_b"], lp["lin2_w"], lp["lin2_b"],
        lp["norm1_g"], lp["norm1_b"], lp["norm2_g"], lp["norm2_b"],
        lp["mb_w"], lp["mb_b"], ln_g, ln_b,
    ]
    out_spec = pl.BlockSpec((1, S, D), xmap)

    # Advisory cost estimate for the XLA scheduler.
    flops = 2 * B * nb * (S * D * 3 * D          # qkv proj
                          + 2 * S * S * D        # scores + attn @ V
                          + S * D * D            # out proj
                          + 2 * S * D * dff      # FFN
                          + S * D * D)           # multi-branch proj
    transcendentals = B * nb * nhead * S * S
    bytes_accessed = (2 * B * S * D * 4
                      + nb * (D * 3 * D + D * D + 2 * D * dff + D * D) * 2
                      + nb * (3 * D + 2 * D + dff + 4 * D) * 4
                      + 3 * D * 4)

    kernel = functools.partial(_mba_layer_kernel, nhead=nhead, eps=eps,
                               add_pe=add_pe)

    return pl.pallas_call(
        kernel,
        out_shape=jax.ShapeDtypeStruct((B, S, D), jnp.float32),
        grid_spec=pltpu.PrefetchScalarGridSpec(
            num_scalar_prefetch=0,
            grid=(B, nb),                         # reduction (branch) axis last
            in_specs=in_specs,
            out_specs=out_spec,
            scratch_shapes=[pltpu.VMEM((S, D), jnp.float32)],
        ),
        compiler_params=pltpu.CompilerParams(
            dimension_semantics=("parallel", "arbitrary")),
        cost_estimate=pl.CostEstimate(flops=flops,
                                      transcendentals=transcendentals,
                                      bytes_accessed=bytes_accessed),
    )(*inputs)


# ----------------------------------------------------------------------------
# Parameter construction (deterministic synthetic init; weights bf16,
# biases / norm params f32; per-layer branch weights stacked on a leading axis)
# ----------------------------------------------------------------------------

def init_params(key, d_model, nhead, num_layers, max_len, num_branches, dff):
    del nhead
    D = d_model
    nb = num_branches
    scale = 0.02
    keys = jax.random.split(key, num_layers)

    layers = []
    for li in range(num_layers):
        ks = jax.random.split(keys[li], 5)
        layers.append({
            "in_proj_w": (jax.random.normal(ks[0], (nb, D, 3 * D), jnp.float32)
                          * scale).astype(jnp.bfloat16),
            "in_proj_b": jnp.zeros((nb, 1, 3 * D), jnp.float32),
            "out_proj_w": (jax.random.normal(ks[1], (nb, D, D), jnp.float32)
                           * scale).astype(jnp.bfloat16),
            "out_proj_b": jnp.zeros((nb, 1, D), jnp.float32),
            "lin1_w": (jax.random.normal(ks[2], (nb, D, dff), jnp.float32)
                       * scale).astype(jnp.bfloat16),
            "lin1_b": jnp.zeros((nb, 1, dff), jnp.float32),
            "lin2_w": (jax.random.normal(ks[3], (nb, dff, D), jnp.float32)
                       * scale).astype(jnp.bfloat16),
            "lin2_b": jnp.zeros((nb, 1, D), jnp.float32),
            "norm1_g": jnp.ones((nb, 1, D), jnp.float32),
            "norm1_b": jnp.zeros((nb, 1, D), jnp.float32),
            "norm2_g": jnp.ones((nb, 1, D), jnp.float32),
            "norm2_b": jnp.zeros((nb, 1, D), jnp.float32),
            # concat(branch_outs) @ W  ==  sum_b branch_out_b @ W_b
            "mb_w": (jax.random.normal(ks[4], (nb, D, D), jnp.float32)
                     * scale).astype(jnp.bfloat16),
            "mb_b": jnp.zeros((1, D), jnp.float32),
        })

    # Positional encoding buffer (same formula as PositionalEncoding)
    position = jnp.arange(max_len, dtype=jnp.float32)[:, None]
    div_term = jnp.exp(jnp.arange(0, d_model, 2, dtype=jnp.float32)
                       * (-math.log(10000.0) / d_model))
    pe = jnp.zeros((max_len, d_model), jnp.float32)
    pe = pe.at[:, 0::2].set(jnp.sin(position * div_term))
    pe = pe.at[:, 1::2].set(jnp.cos(position * div_term))

    return {
        "layers": layers,
        "pe": pe,                                   # (max_len, d_model)
        "ln_g": jnp.ones((1, d_model), jnp.float32),
        "ln_b": jnp.zeros((1, d_model), jnp.float32),
    }


# ----------------------------------------------------------------------------
# Forward pass
# ----------------------------------------------------------------------------

def encoder_transformer_forward(params, inputs, nhead):
    """inputs: (B, S, D) with S == max_len.  Returns (B, S, D).

    The PyTorch permute(1,0,2)/permute back are pure layout changes (all math
    is per-token / per-sequence within a batch), so we keep (B, S, D)
    throughout and skip the transposes entirely.  The positional-encoding add
    is fused into the first layer's kernel.
    """
    B, S, D = inputs.shape
    pe = params["pe"][:S, :]                    # (S, D)
    layers = params["layers"]
    if not layers:                              # degenerate case: PE only
        return inputs + pe[None]
    x = inputs
    for li, lp in enumerate(layers):
        x = mba_layer_forward(x, lp, params["ln_g"], params["ln_b"], nhead,
                              pe=pe if li == 0 else None)
    return x


# ----------------------------------------------------------------------------

if __name__ == "__main__":
    # small shapes consistent with the module
    B = 2
    D_MODEL = 32
    NHEAD = 4
    NUM_LAYERS = 2
    MAX_LEN = 8              # sequence length == max_len (x + pe broadcast)
    NUM_BRANCHES = 2
    DIM_FEEDFORWARD = 2048   # PyTorch TransformerEncoderLayer default

    key = jax.random.PRNGKey(0)
    pkey, xkey = jax.random.split(key)
    params = init_params(pkey, D_MODEL, NHEAD, NUM_LAYERS, MAX_LEN,
                         NUM_BRANCHES, DIM_FEEDFORWARD)
    inputs = jax.random.normal(xkey, (B, MAX_LEN, D_MODEL), jnp.float32)

    out = encoder_transformer_forward(params, inputs, NHEAD)
    out = jax.block_until_ready(out)
    assert out.shape == (B, MAX_LEN, D_MODEL), out.shape
    assert bool(jnp.all(jnp.isfinite(out)))
    print("KERNEL_OK")
</pallas_src>

<mosaic_0001>
module attributes {stable_mosaic.version = 11 : i64} {
  func.func @_mba_layer_kernel(%arg0: i32, %arg1: i32, %arg2: memref<1x8x32xf32, #tpu.memory_space<vmem>>, %arg3: memref<8x32xf32, #tpu.memory_space<vmem>>, %arg4: memref<1x32x96xbf16, #tpu.memory_space<vmem>>, %arg5: memref<1x1x96xf32, #tpu.memory_space<vmem>>, %arg6: memref<1x32x32xbf16, #tpu.memory_space<vmem>>, %arg7: memref<1x1x32xf32, #tpu.memory_space<vmem>>, %arg8: memref<1x32x2048xbf16, #tpu.memory_space<vmem>>, %arg9: memref<1x1x2048xf32, #tpu.memory_space<vmem>>, %arg10: memref<1x2048x32xbf16, #tpu.memory_space<vmem>>, %arg11: memref<1x1x32xf32, #tpu.memory_space<vmem>>, %arg12: memref<1x1x32xf32, #tpu.memory_space<vmem>>, %arg13: memref<1x1x32xf32, #tpu.memory_space<vmem>>, %arg14: memref<1x1x32xf32, #tpu.memory_space<vmem>>, %arg15: memref<1x1x32xf32, #tpu.memory_space<vmem>>, %arg16: memref<1x32x32xbf16, #tpu.memory_space<vmem>>, %arg17: memref<1x32xf32, #tpu.memory_space<vmem>>, %arg18: memref<1x32xf32, #tpu.memory_space<vmem>>, %arg19: memref<1x32xf32, #tpu.memory_space<vmem>>, %arg20: memref<1x8x32xf32, #tpu.memory_space<vmem>>, %arg21: memref<8x32xf32, #tpu.memory_space<vmem>>) attributes {dimension_semantics = [#tpu.dimension_semantics<parallel>, #tpu.dimension_semantics<arbitrary>], iteration_bounds = array<i64: 2, 2>, scalar_prefetch = 0 : i64, scratch_operands = 1 : i64, tpu.core_type = #tpu.core_type<tc>, window_params = [{transform_indices = @transform_0, window_bounds = array<i64: 1, 8, 32>}, {pipeline_mode = #tpu.pipeline_mode<synchronous>, transform_indices = @transform_1, window_bounds = array<i64: 8, 32>}, {transform_indices = @transform_2, window_bounds = array<i64: 1, 32, 96>}, {transform_indices = @transform_3, window_bounds = array<i64: 1, 1, 96>}, {transform_indices = @transform_4, window_bounds = array<i64: 1, 32, 32>}, {transform_indices = @transform_5, window_bounds = array<i64: 1, 1, 32>}, {transform_indices = @transform_6, window_bounds = array<i64: 1, 32, 2048>}, {transform_indices = @transform_7, window_bounds = array<i64: 1, 1, 2048>}, {transform_indices = @transform_8, window_bounds = array<i64: 1, 2048, 32>}, {transform_indices = @transform_9, window_bounds = array<i64: 1, 1, 32>}, {transform_indices = @transform_10, window_bounds = array<i64: 1, 1, 32>}, {transform_indices = @transform_11, window_bounds = array<i64: 1, 1, 32>}, {transform_indices = @transform_12, window_bounds = array<i64: 1, 1, 32>}, {transform_indices = @transform_13, window_bounds = array<i64: 1, 1, 32>}, {transform_indices = @transform_14, window_bounds = array<i64: 1, 32, 32>}, {pipeline_mode = #tpu.pipeline_mode<synchronous>, transform_indices = @transform_15, window_bounds = array<i64: 1, 32>}, {pipeline_mode = #tpu.pipeline_mode<synchronous>, transform_indices = @transform_16, window_bounds = array<i64: 1, 32>}, {pipeline_mode = #tpu.pipeline_mode<synchronous>, transform_indices = @transform_17, window_bounds = array<i64: 1, 32>}, {transform_indices = @transform_18, window_bounds = array<i64: 1, 8, 32>}]} {
    %c0 = arith.constant 0 : index
    %c0_0 = arith.constant 0 : index
    %c0_1 = arith.constant 0 : index
    %0 = vector.load %arg2[%c0, %c0_0, %c0_1] : memref<1x8x32xf32, #tpu.memory_space<vmem>>, vector<1x8x32xf32>
    %1 = vector.shape_cast %0 : vector<1x8x32xf32> to vector<8x32xf32>
    %c0_2 = arith.constant 0 : index
    %c0_3 = arith.constant 0 : index
    %2 = vector.load %arg3[%c0_2, %c0_3] : memref<8x32xf32, #tpu.memory_space<vmem>>, vector<8x32xf32>
    %3 = arith.addf %1, %2 : vector<8x32xf32>
    %c0_4 = arith.constant 0 : index
    %c0_5 = arith.constant 0 : index
    %c0_6 = arith.constant 0 : index
    %4 = vector.load %arg4[%c0_4, %c0_5, %c0_6] : memref<1x32x96xbf16, #tpu.memory_space<vmem>>, vector<1x32x96xbf16>
    %5 = vector.shape_cast %4 : vector<1x32x96xbf16> to vector<32x96xbf16>
    %6 = arith.truncf %3 : vector<8x32xf32> to vector<8x32xbf16>
    %cst = arith.constant dense<0.000000e+00> : vector<8x96xf32>
    %7 = tpu.matmul %6, %5, %cst {dimension_numbers = #tpu.dot_dimension_numbers<[1], [0], [0], [1], [0, 0, 1, 1], [], []>} : vector<8x32xbf16>, vector<32x96xbf16>, vector<8x96xf32> -> vector<8x96xf32>
    %c0_7 = arith.constant 0 : index
    %c0_8 = arith.constant 0 : index
    %c0_9 = arith.constant 0 : index
    %8 = vector.load %arg5[%c0_7, %c0_8, %c0_9] : memref<1x1x96xf32, #tpu.memory_space<vmem>>, vector<1x1x96xf32>
    %9 = vector.shape_cast %8 : vector<1x1x96xf32> to vector<1x96xf32>
    %10 = vector.broadcast %9 : vector<1x96xf32> to vector<8x96xf32>
    %11 = arith.addf %7, %10 : vector<8x96xf32>
    %12 = vector.extract_strided_slice %11 {offsets = [0, 0], sizes = [8, 32], strides = [1, 1]} : vector<8x96xf32> to vector<8x32xf32>
    %cst_10 = arith.constant 0.353553385 : f32
    %13 = vector.broadcast %cst_10 : f32 to vector<8x32xf32>
    %14 = arith.mulf %12, %13 : vector<8x32xf32>
    %15 = vector.extract_strided_slice %11 {offsets = [0, 32], sizes = [8, 32], strides = [1, 1]} : vector<8x96xf32> to vector<8x32xf32>
    %16 = vector.extract_strided_slice %11 {offsets = [0, 64], sizes = [8, 32], strides = [1, 1]} : vector<8x96xf32> to vector<8x32xf32>
    %17 = vector.extract_strided_slice %14 {offsets = [0, 0], sizes = [8, 8], strides = [1, 1]} : vector<8x32xf32> to vector<8x8xf32>
    %18 = arith.truncf %17 : vector<8x8xf32> to vector<8x8xbf16>
    %19 = vector.extract_strided_slice %15 {offsets = [0, 0], sizes = [8, 8], strides = [1, 1]} : vector<8x32xf32> to vector<8x8xf32>
    %20 = arith.truncf %19 : vector<8x8xf32> to vector<8x8xbf16>
    %21 = vector.extract_strided_slice %16 {offsets = [0, 0], sizes = [8, 8], strides = [1, 1]} : vector<8x32xf32> to vector<8x8xf32>
    %22 = arith.truncf %21 : vector<8x8xf32> to vector<8x8xbf16>
    %cst_11 = arith.constant dense<0.000000e+00> : vector<8x8xf32>
    %23 = tpu.matmul %18, %20, %cst_11 {dimension_numbers = #tpu.dot_dimension_numbers<[1], [1], [0], [0], [0, 0, 1, 0], [], []>} : vector<8x8xbf16>, vector<8x8xbf16>, vector<8x8xf32> -> vector<8x8xf32>
    %cst_12 = arith.constant dense<0xFF800000> : vector<8xf32>
    %24 = vector.multi_reduction <maximumf>, %23, %cst_12 [1] : vector<8x8xf32> to vector<8xf32>
    %25 = vector.shape_cast %24 : vector<8xf32> to vector<8x1xf32>
    %26 = vector.broadcast %25 : vector<8x1xf32> to vector<8x8xf32>
    %27 = arith.subf %23, %26 : vector<8x8xf32>
    %28 = math.exp %27 : vector<8x8xf32>
    %cst_13 = arith.constant dense<0.000000e+00> : vector<8xf32>
    %29 = vector.multi_reduction <add>, %28, %cst_13 [1] : vector<8x8xf32> to vector<8xf32>
    %30 = vector.shape_cast %29 : vector<8xf32> to vector<8x1xf32>
    %31 = tpu.reciprocal %30 {approx = true} : vector<8x1xf32> -> vector<8x1xf32>
    %32 = vector.broadcast %31 : vector<8x1xf32> to vector<8x8xf32>
    %33 = arith.mulf %28, %32 : vector<8x8xf32>
    %34 = arith.truncf %33 : vector<8x8xf32> to vector<8x8xbf16>
    %cst_14 = arith.constant dense<0.000000e+00> : vector<8x8xf32>
    %35 = tpu.matmul %34, %22, %cst_14 {dimension_numbers = #tpu.dot_dimension_numbers<[1], [0], [0], [1], [0, 0, 1, 1], [], []>} : vector<8x8xbf16>, vector<8x8xbf16>, vector<8x8xf32> -> vector<8x8xf32>
    %36 = vector.extract_strided_slice %14 {offsets = [0, 8], sizes = [8, 8], strides = [1, 1]} : vector<8x32xf32> to vector<8x8xf32>
    %37 = arith.truncf %36 : vector<8x8xf32> to vector<8x8xbf16>
    %38 = vector.extract_strided_slice %15 {offsets = [0, 8], sizes = [8, 8], strides = [1, 1]} : vector<8x32xf32> to vector<8x8xf32>
    %39 = arith.truncf %38 : vector<8x8xf32> to vector<8x8xbf16>
    %40 = vector.extract_strided_slice %16 {offsets = [0, 8], sizes = [8, 8], strides = [1, 1]} : vector<8x32xf32> to vector<8x8xf32>
    %41 = arith.truncf %40 : vector<8x8xf32> to vector<8x8xbf16>
    %cst_15 = arith.constant dense<0.000000e+00> : vector<8x8xf32>
    %42 = tpu.matmul %37, %39, %cst_15 {dimension_numbers = #tpu.dot_dimension_numbers<[1], [1], [0], [0], [0, 0, 1, 0], [], []>} : vector<8x8xbf16>, vector<8x8xbf16>, vector<8x8xf32> -> vector<8x8xf32>
    %cst_16 = arith.constant dense<0xFF800000> : vector<8xf32>
    %43 = vector.multi_reduction <maximumf>, %42, %cst_16 [1] : vector<8x8xf32> to vector<8xf32>
    %44 = vector.shape_cast %43 : vector<8xf32> to vector<8x1xf32>
    %45 = vector.broadcast %44 : vector<8x1xf32> to vector<8x8xf32>
    %46 = arith.subf %42, %45 : vector<8x8xf32>
    %47 = math.exp %46 : vector<8x8xf32>
    %cst_17 = arith.constant dense<0.000000e+00> : vector<8xf32>
    %48 = vector.multi_reduction <add>, %47, %cst_17 [1] : vector<8x8xf32> to vector<8xf32>
    %49 = vector.shape_cast %48 : vector<8xf32> to vector<8x1xf32>
    %50 = tpu.reciprocal %49 {approx = true} : vector<8x1xf32> -> vector<8x1xf32>
    %51 = vector.broadcast %50 : vector<8x1xf32> to vector<8x8xf32>
    %52 = arith.mulf %47, %51 : vector<8x8xf32>
    %53 = arith.truncf %52 : vector<8x8xf32> to vector<8x8xbf16>
    %cst_18 = arith.constant dense<0.000000e+00> : vector<8x8xf32>
    %54 = tpu.matmul %53, %41, %cst_18 {dimension_numbers = #tpu.dot_dimension_numbers<[1], [0], [0], [1], [0, 0, 1, 1], [], []>} : vector<8x8xbf16>, vector<8x8xbf16>, vector<8x8xf32> -> vector<8x8xf32>
    %55 = vector.extract_strided_slice %14 {offsets = [0, 16], sizes = [8, 8], strides = [1, 1]} : vector<8x32xf32> to vector<8x8xf32>
    %56 = arith.truncf %55 : vector<8x8xf32> to vector<8x8xbf16>
    %57 = vector.extract_strided_slice %15 {offsets = [0, 16], sizes = [8, 8], strides = [1, 1]} : vector<8x32xf32> to vector<8x8xf32>
    %58 = arith.truncf %57 : vector<8x8xf32> to vector<8x8xbf16>
    %59 = vector.extract_strided_slice %16 {offsets = [0, 16], sizes = [8, 8], strides = [1, 1]} : vector<8x32xf32> to vector<8x8xf32>
    %60 = arith.truncf %59 : vector<8x8xf32> to vector<8x8xbf16>
    %cst_19 = arith.constant dense<0.000000e+00> : vector<8x8xf32>
    %61 = tpu.matmul %56, %58, %cst_19 {dimension_numbers = #tpu.dot_dimension_numbers<[1], [1], [0], [0], [0, 0, 1, 0], [], []>} : vector<8x8xbf16>, vector<8x8xbf16>, vector<8x8xf32> -> vector<8x8xf32>
    %cst_20 = arith.constant dense<0xFF800000> : vector<8xf32>
    %62 = vector.multi_reduction <maximumf>, %61, %cst_20 [1] : vector<8x8xf32> to vector<8xf32>
    %63 = vector.shape_cast %62 : vector<8xf32> to vector<8x1xf32>
    %64 = vector.broadcast %63 : vector<8x1xf32> to vector<8x8xf32>
    %65 = arith.subf %61, %64 : vector<8x8xf32>
    %66 = math.exp %65 : vector<8x8xf32>
    %cst_21 = arith.constant dense<0.000000e+00> : vector<8xf32>
    %67 = vector.multi_reduction <add>, %66, %cst_21 [1] : vector<8x8xf32> to vector<8xf32>
    %68 = vector.shape_cast %67 : vector<8xf32> to vector<8x1xf32>
    %69 = tpu.reciprocal %68 {approx = true} : vector<8x1xf32> -> vector<8x1xf32>
    %70 = vector.broadcast %69 : vector<8x1xf32> to vector<8x8xf32>
    %71 = arith.mulf %66, %70 : vector<8x8xf32>
    %72 = arith.truncf %71 : vector<8x8xf32> to vector<8x8xbf16>
    %cst_22 = arith.constant dense<0.000000e+00> : vector<8x8xf32>
    %73 = tpu.matmul %72, %60, %cst_22 {dimension_numbers = #tpu.dot_dimension_numbers<[1], [0], [0], [1], [0, 0, 1, 1], [], []>} : vector<8x8xbf16>, vector<8x8xbf16>, vector<8x8xf32> -> vector<8x8xf32>
    %74 = vector.extract_strided_slice %14 {offsets = [0, 24], sizes = [8, 8], strides = [1, 1]} : vector<8x32xf32> to vector<8x8xf32>
    %75 = arith.truncf %74 : vector<8x8xf32> to vector<8x8xbf16>
    %76 = vector.extract_strided_slice %15 {offsets = [0, 24], sizes = [8, 8], strides = [1, 1]} : vector<8x32xf32> to vector<8x8xf32>
    %77 = arith.truncf %76 : vector<8x8xf32> to vector<8x8xbf16>
    %78 = vector.extract_strided_slice %16 {offsets = [0, 24], sizes = [8, 8], strides = [1, 1]} : vector<8x32xf32> to vector<8x8xf32>
    %79 = arith.truncf %78 : vector<8x8xf32> to vector<8x8xbf16>
    %cst_23 = arith.constant dense<0.000000e+00> : vector<8x8xf32>
    %80 = tpu.matmul %75, %77, %cst_23 {dimension_numbers = #tpu.dot_dimension_numbers<[1], [1], [0], [0], [0, 0, 1, 0], [], []>} : vector<8x8xbf16>, vector<8x8xbf16>, vector<8x8xf32> -> vector<8x8xf32>
    %cst_24 = arith.constant dense<0xFF800000> : vector<8xf32>
    %81 = vector.multi_reduction <maximumf>, %80, %cst_24 [1] : vector<8x8xf32> to vector<8xf32>
    %82 = vector.shape_cast %81 : vector<8xf32> to vector<8x1xf32>
    %83 = vector.broadcast %82 : vector<8x1xf32> to vector<8x8xf32>
    %84 = arith.subf %80, %83 : vector<8x8xf32>
    %85 = math.exp %84 : vector<8x8xf32>
    %cst_25 = arith.constant dense<0.000000e+00> : vector<8xf32>
    %86 = vector.multi_reduction <add>, %85, %cst_25 [1] : vector<8x8xf32> to vector<8xf32>
    %87 = vector.shape_cast %86 : vector<8xf32> to vector<8x1xf32>
    %88 = tpu.reciprocal %87 {approx = true} : vector<8x1xf32> -> vector<8x1xf32>
    %89 = vector.broadcast %88 : vector<8x1xf32> to vector<8x8xf32>
    %90 = arith.mulf %85, %89 : vector<8x8xf32>
    %91 = arith.truncf %90 : vector<8x8xf32> to vector<8x8xbf16>
    %cst_26 = arith.constant dense<0.000000e+00> : vector<8x8xf32>
    %92 = tpu.matmul %91, %79, %cst_26 {dimension_numbers = #tpu.dot_dimension_numbers<[1], [0], [0], [1], [0, 0, 1, 1], [], []>} : vector<8x8xbf16>, vector<8x8xbf16>, vector<8x8xf32> -> vector<8x8xf32>
    %93 = tpu.concatenate %35, %54, %73, %92 in 1 : vector<8x8xf32>, vector<8x8xf32>, vector<8x8xf32>, vector<8x8xf32> -> vector<8x32xf32>
    %c0_27 = arith.constant 0 : index
    %c0_28 = arith.constant 0 : index
    %c0_29 = arith.constant 0 : index
    %94 = vector.load %arg6[%c0_27, %c0_28, %c0_29] : memref<1x32x32xbf16, #tpu.memory_space<vmem>>, vector<1x32x32xbf16>
    %95 = vector.shape_cast %94 : vector<1x32x32xbf16> to vector<32x32xbf16>
    %96 = arith.truncf %93 : vector<8x32xf32> to vector<8x32xbf16>
    %cst_30 = arith.constant dense<0.000000e+00> : vector<8x32xf32>
    %97 = tpu.matmul %96, %95, %cst_30 {dimension_numbers = #tpu.dot_dimension_numbers<[1], [0], [0], [1], [0, 0, 1, 1], [], []>} : vector<8x32xbf16>, vector<32x32xbf16>, vector<8x32xf32> -> vector<8x32xf32>
    %c0_31 = arith.constant 0 : index
    %c0_32 = arith.constant 0 : index
    %c0_33 = arith.constant 0 : index
    %98 = vector.load %arg7[%c0_31, %c0_32, %c0_33] : memref<1x1x32xf32, #tpu.memory_space<vmem>>, vector<1x1x32xf32>
    %99 = vector.shape_cast %98 : vector<1x1x32xf32> to vector<1x32xf32>
    %100 = vector.broadcast %99 : vector<1x32xf32> to vector<8x32xf32>
    %101 = arith.addf %97, %100 : vector<8x32xf32>
    %102 = arith.addf %3, %101 : vector<8x32xf32>
    %c0_34 = arith.constant 0 : index
    %c0_35 = arith.constant 0 : index
    %c0_36 = arith.constant 0 : index
    %103 = vector.load %arg12[%c0_34, %c0_35, %c0_36] : memref<1x1x32xf32, #tpu.memory_space<vmem>>, vector<1x1x32xf32>
    %104 = vector.shape_cast %103 : vector<1x1x32xf32> to vector<1x32xf32>
    %c0_37 = arith.constant 0 : index
    %c0_38 = arith.constant 0 : index
    %c0_39 = arith.constant 0 : index
    %105 = vector.load %arg13[%c0_37, %c0_38, %c0_39] : memref<1x1x32xf32, #tpu.memory_space<vmem>>, vector<1x1x32xf32>
    %106 = vector.shape_cast %105 : vector<1x1x32xf32> to vector<1x32xf32>
    %cst_40 = arith.constant dense<0.000000e+00> : vector<8xf32>
    %107 = vector.multi_reduction <add>, %102, %cst_40 [1] : vector<8x32xf32> to vector<8xf32>
    %108 = vector.shape_cast %107 : vector<8xf32> to vector<8x1xf32>
    %cst_41 = arith.constant 3.200000e+01 : f32
    %109 = vector.broadcast %cst_41 : f32 to vector<8x1xf32>
    %110 = arith.divf %108, %109 : vector<8x1xf32>
    %111 = vector.broadcast %110 : vector<8x1xf32> to vector<8x32xf32>
    %112 = arith.subf %102, %111 : vector<8x32xf32>
    %113 = arith.mulf %112, %112 : vector<8x32xf32>
    %cst_42 = arith.constant dense<0.000000e+00> : vector<8xf32>
    %114 = vector.multi_reduction <add>, %113, %cst_42 [1] : vector<8x32xf32> to vector<8xf32>
    %115 = vector.shape_cast %114 : vector<8xf32> to vector<8x1xf32>
    %cst_43 = arith.constant 3.200000e+01 : f32
    %116 = vector.broadcast %cst_43 : f32 to vector<8x1xf32>
    %117 = arith.divf %115, %116 : vector<8x1xf32>
    %cst_44 = arith.constant 9.99999974E-6 : f32
    %118 = vector.broadcast %cst_44 : f32 to vector<8x1xf32>
    %119 = arith.addf %117, %118 : vector<8x1xf32>
    %120 = math.rsqrt %119 : vector<8x1xf32>
    %121 = vector.broadcast %120 : vector<8x1xf32> to vector<8x32xf32>
    %122 = arith.mulf %112, %121 : vector<8x32xf32>
    %123 = vector.broadcast %104 : vector<1x32xf32> to vector<8x32xf32>
    %124 = arith.mulf %122, %123 : vector<8x32xf32>
    %125 = vector.broadcast %106 : vector<1x32xf32> to vector<8x32xf32>
    %126 = arith.addf %124, %125 : vector<8x32xf32>
    %c0_45 = arith.constant 0 : index
    %c0_46 = arith.constant 0 : index
    %c0_47 = arith.constant 0 : index
    %127 = vector.load %arg8[%c0_45, %c0_46, %c0_47] : memref<1x32x2048xbf16, #tpu.memory_space<vmem>>, vector<1x32x2048xbf16>
    %128 = vector.shape_cast %127 : vector<1x32x2048xbf16> to vector<32x2048xbf16>
    %129 = arith.truncf %126 : vector<8x32xf32> to vector<8x32xbf16>
    %cst_48 = arith.constant dense<0.000000e+00> : vector<8x2048xf32>
    %130 = tpu.matmul %129, %128, %cst_48 {dimension_numbers = #tpu.dot_dimension_numbers<[1], [0], [0], [1], [0, 0, 1, 1], [], []>} : vector<8x32xbf16>, vector<32x2048xbf16>, vector<8x2048xf32> -> vector<8x2048xf32>
    %c0_49 = arith.constant 0 : index
    %c0_50 = arith.constant 0 : index
    %c0_51 = arith.constant 0 : index
    %131 = vector.load %arg9[%c0_49, %c0_50, %c0_51] : memref<1x1x2048xf32, #tpu.memory_space<vmem>>, vector<1x1x2048xf32>
    %132 = vector.shape_cast %131 : vector<1x1x2048xf32> to vector<1x2048xf32>
    %133 = vector.broadcast %132 : vector<1x2048xf32> to vector<8x2048xf32>
    %134 = arith.addf %130, %133 : vector<8x2048xf32>
    %cst_52 = arith.constant 0.000000e+00 : f32
    %135 = vector.broadcast %cst_52 : f32 to vector<8x2048xf32>
    %136 = arith.maximumf %134, %135 : vector<8x2048xf32>
    %c0_53 = arith.constant 0 : index
    %c0_54 = arith.constant 0 : index
    %c0_55 = arith.constant 0 : index
    %137 = vector.load %arg10[%c0_53, %c0_54, %c0_55] : memref<1x2048x32xbf16, #tpu.memory_space<vmem>>, vector<1x2048x32xbf16>
    %138 = vector.shape_cast %137 : vector<1x2048x32xbf16> to vector<2048x32xbf16>
    %139 = arith.truncf %136 : vector<8x2048xf32> to vector<8x2048xbf16>
    %cst_56 = arith.constant dense<0.000000e+00> : vector<8x32xf32>
    %140 = tpu.matmul %139, %138, %cst_56 {dimension_numbers = #tpu.dot_dimension_numbers<[1], [0], [0], [1], [0, 0, 1, 1], [], []>} : vector<8x2048xbf16>, vector<2048x32xbf16>, vector<8x32xf32> -> vector<8x32xf32>
    %c0_57 = arith.constant 0 : index
    %c0_58 = arith.constant 0 : index
    %c0_59 = arith.constant 0 : index
    %141 = vector.load %arg11[%c0_57, %c0_58, %c0_59] : memref<1x1x32xf32, #tpu.memory_space<vmem>>, vector<1x1x32xf32>
    %142 = vector.shape_cast %141 : vector<1x1x32xf32> to vector<1x32xf32>
    %143 = vector.broadcast %142 : vector<1x32xf32> to vector<8x32xf32>
    %144 = arith.addf %140, %143 : vector<8x32xf32>
    %145 = arith.addf %126, %144 : vector<8x32xf32>
    %c0_60 = arith.constant 0 : index
    %c0_61 = arith.constant 0 : index
    %c0_62 = arith.constant 0 : index
    %146 = vector.load %arg14[%c0_60, %c0_61, %c0_62] : memref<1x1x32xf32, #tpu.memory_space<vmem>>, vector<1x1x32xf32>
    %147 = vector.shape_cast %146 : vector<1x1x32xf32> to vector<1x32xf32>
    %c0_63 = arith.constant 0 : index
    %c0_64 = arith.constant 0 : index
    %c0_65 = arith.constant 0 : index
    %148 = vector.load %arg15[%c0_63, %c0_64, %c0_65] : memref<1x1x32xf32, #tpu.memory_space<vmem>>, vector<1x1x32xf32>
    %149 = vector.shape_cast %148 : vector<1x1x32xf32> to vector<1x32xf32>
    %cst_66 = arith.constant dense<0.000000e+00> : vector<8xf32>
    %150 = vector.multi_reduction <add>, %145, %cst_66 [1] : vector<8x32xf32> to vector<8xf32>
    %151 = vector.shape_cast %150 : vector<8xf32> to vector<8x1xf32>
    %cst_67 = arith.constant 3.200000e+01 : f32
    %152 = vector.broadcast %cst_67 : f32 to vector<8x1xf32>
    %153 = arith.divf %151, %152 : vector<8x1xf32>
    %154 = vector.broadcast %153 : vector<8x1xf32> to vector<8x32xf32>
    %155 = arith.subf %145, %154 : vector<8x32xf32>
    %156 = arith.mulf %155, %155 : vector<8x32xf32>
    %cst_68 = arith.constant dense<0.000000e+00> : vector<8xf32>
    %157 = vector.multi_reduction <add>, %156, %cst_68 [1] : vector<8x32xf32> to vector<8xf32>
    %158 = vector.shape_cast %157 : vector<8xf32> to vector<8x1xf32>
    %cst_69 = arith.constant 3.200000e+01 : f32
    %159 = vector.broadcast %cst_69 : f32 to vector<8x1xf32>
    %160 = arith.divf %158, %159 : vector<8x1xf32>
    %cst_70 = arith.constant 9.99999974E-6 : f32
    %161 = vector.broadcast %cst_70 : f32 to vector<8x1xf32>
    %162 = arith.addf %160, %161 : vector<8x1xf32>
    %163 = math.rsqrt %162 : vector<8x1xf32>
    %164 = vector.broadcast %163 : vector<8x1xf32> to vector<8x32xf32>
    %165 = arith.mulf %155, %164 : vector<8x32xf32>
    %166 = vector.broadcast %147 : vector<1x32xf32> to vector<8x32xf32>
    %167 = arith.mulf %165, %166 : vector<8x32xf32>
    %168 = vector.broadcast %149 : vector<1x32xf32> to vector<8x32xf32>
    %169 = arith.addf %167, %168 : vector<8x32xf32>
    %c0_71 = arith.constant 0 : index
    %c0_72 = arith.constant 0 : index
    %c0_73 = arith.constant 0 : index
    %170 = vector.load %arg16[%c0_71, %c0_72, %c0_73] : memref<1x32x32xbf16, #tpu.memory_space<vmem>>, vector<1x32x32xbf16>
    %171 = vector.shape_cast %170 : vector<1x32x32xbf16> to vector<32x32xbf16>
    %172 = arith.truncf %169 : vector<8x32xf32> to vector<8x32xbf16>
    %cst_74 = arith.constant dense<0.000000e+00> : vector<8x32xf32>
    %173 = tpu.matmul %172, %171, %cst_74 {dimension_numbers = #tpu.dot_dimension_numbers<[1], [0], [0], [1], [0, 0, 1, 1], [], []>} : vector<8x32xbf16>, vector<32x32xbf16>, vector<8x32xf32> -> vector<8x32xf32>
    %c0_i32 = arith.constant 0 : i32
    %174 = arith.cmpi eq, %arg1, %c0_i32 : i32
    %175 = arith.extui %174 : i1 to i32
    %c0_i32_75 = arith.constant 0 : i32
    %176 = arith.cmpi ne, %175, %c0_i32_75 : i32
    scf.if %176 {
      %cst_81 = arith.constant 0.000000e+00 : f32
      %183 = vector.broadcast %cst_81 : f32 to vector<8x32xf32>
      %c0_82 = arith.constant 0 : index
      %c0_83 = arith.constant 0 : index
      %184 = vector.load %arg21[%c0_82, %c0_83] : memref<8x32xf32, #tpu.memory_space<vmem>>, vector<8x32xf32>
      tpu.vector_store %arg21[%c0_82, %c0_83], %183 {strides = array<i32>} : memref<8x32xf32, #tpu.memory_space<vmem>>, vector<8x32xf32>,
    } else {
    }
    %c0_76 = arith.constant 0 : index
    %c0_77 = arith.constant 0 : index
    %177 = vector.load %arg21[%c0_76, %c0_77] : memref<8x32xf32, #tpu.memory_space<vmem>>, vector<8x32xf32>
    %178 = arith.addf %177, %173 : vector<8x32xf32>
    %c0_78 = arith.constant 0 : index
    %c0_79 = arith.constant 0 : index
    %179 = vector.load %arg21[%c0_78, %c0_79] : memref<8x32xf32, #tpu.memory_space<vmem>>, vector<8x32xf32>
    tpu.vector_store %arg21[%c0_78, %c0_79], %178 {strides = array<i32>} : memref<8x32xf32, #tpu.memory_space<vmem>>, vector<8x32xf32>,
    %c1_i32 = arith.constant 1 : i32
    %180 = arith.cmpi eq, %arg1, %c1_i32 : i32
    %181 = arith.extui %180 : i1 to i32
    %c0_i32_80 = arith.constant 0 : i32
    %182 = arith.cmpi ne, %181, %c0_i32_80 : i32
    scf.if %182 {
      %c0_81 = arith.constant 0 : index
      %c0_82 = arith.constant 0 : index
      %183 = vector.load %arg21[%c0_81, %c0_82] : memref<8x32xf32, #tpu.memory_space<vmem>>, vector<8x32xf32>
      %184 = arith.addf %3, %183 : vector<8x32xf32>
      %c0_83 = arith.constant 0 : index
      %c0_84 = arith.constant 0 : index
      %185 = vector.load %arg17[%c0_83, %c0_84] : memref<1x32xf32, #tpu.memory_space<vmem>>, vector<1x32xf32>
      %186 = vector.broadcast %185 : vector<1x32xf32> to vector<8x32xf32>
      %187 = arith.addf %184, %186 : vector<8x32xf32>
      %c0_85 = arith.constant 0 : index
      %c0_86 = arith.constant 0 : index
      %188 = vector.load %arg18[%c0_85, %c0_86] : memref<1x32xf32, #tpu.memory_space<vmem>>, vector<1x32xf32>
      %c0_87 = arith.constant 0 : index
      %c0_88 = arith.constant 0 : index
      %189 = vector.load %arg19[%c0_87, %c0_88] : memref<1x32xf32, #tpu.memory_space<vmem>>, vector<1x32xf32>
      %cst_89 = arith.constant dense<0.000000e+00> : vector<8xf32>
      %190 = vector.multi_reduction <add>, %187, %cst_89 [1] : vector<8x32xf32> to vector<8xf32>
      %191 = vector.shape_cast %190 : vector<8xf32> to vector<8x1xf32>
      %cst_90 = arith.constant 3.200000e+01 : f32
      %192 = vector.broadcast %cst_90 : f32 to vector<8x1xf32>
      %193 = arith.divf %191, %192 : vector<8x1xf32>
      %194 = vector.broadcast %193 : vector<8x1xf32> to vector<8x32xf32>
      %195 = arith.subf %187, %194 : vector<8x32xf32>
      %196 = arith.mulf %195, %195 : vector<8x32xf32>
      %cst_91 = arith.constant dense<0.000000e+00> : vector<8xf32>
      %197 = vector.multi_reduction <add>, %196, %cst_91 [1] : vector<8x32xf32> to vector<8xf32>
      %198 = vector.shape_cast %197 : vector<8xf32> to vector<8x1xf32>
      %cst_92 = arith.constant 3.200000e+01 : f32
      %199 = vector.broadcast %cst_92 : f32 to vector<8x1xf32>
      %200 = arith.divf %198, %199 : vector<8x1xf32>
      %cst_93 = arith.constant 9.99999974E-6 : f32
      %201 = vector.broadcast %cst_93 : f32 to vector<8x1xf32>
      %202 = arith.addf %200, %201 : vector<8x1xf32>
      %203 = math.rsqrt %202 : vector<8x1xf32>
      %204 = vector.broadcast %203 : vector<8x1xf32> to vector<8x32xf32>
      %205 = arith.mulf %195, %204 : vector<8x32xf32>
      %206 = vector.broadcast %188 : vector<1x32xf32> to vector<8x32xf32>
      %207 = arith.mulf %205, %206 : vector<8x32xf32>
      %208 = vector.broadcast %189 : vector<1x32xf32> to vector<8x32xf32>
      %209 = arith.addf %207, %208 : vector<8x32xf32>
      %c0_94 = arith.constant 0 : index
      %c0_95 = arith.constant 0 : index
      %c0_96 = arith.constant 0 : index
      %210 = vector.load %arg20[%c0_94, %c0_95, %c0_96] : memref<1x8x32xf32, #tpu.memory_space<vmem>>, vector<1x8x32xf32>
      %211 = vector.shape_cast %210 : vector<1x8x32xf32> to vector<8x32xf32>
      %212 = vector.shape_cast %209 : vector<8x32xf32> to vector<1x8x32xf32>
      tpu.vector_store %arg20[%c0_94, %c0_95, %c0_96], %212 {strides = array<i32>} : memref<1x8x32xf32, #tpu.memory_space<vmem>>, vector<1x8x32xf32>,
    } else {
    }
    return
  }
  func.func @transform_0(%arg0: i32, %arg1: i32) -> (i32, i32, i32) {
    %c0_i32 = arith.constant 0 : i32
    %c0_i32_0 = arith.constant 0 : i32
    %c0_i32_1 = arith.constant 0 : i32
    return %arg0, %c0_i32, %c0_i32_0 : i32, i32, i32
  }
  func.func @transform_1(%arg0: i32, %arg1: i32) -> (i32, i32) {
    %c0_i32 = arith.constant 0 : i32
    %c0_i32_0 = arith.constant 0 : i32
    %c0_i32_1 = arith.constant 0 : i32
    return %c0_i32, %c0_i32_0 : i32, i32
  }
  func.func @transform_2(%arg0: i32, %arg1: i32) -> (i32, i32, i32) {
    %c0_i32 = arith.constant 0 : i32
    %c0_i32_0 = arith.constant 0 : i32
    %c0_i32_1 = arith.constant 0 : i32
    return %arg1, %c0_i32, %c0_i32_0 : i32, i32, i32
  }
  func.func @transform_3(%arg0: i32, %arg1: i32) -> (i32, i32, i32) {
    %c0_i32 = arith.constant 0 : i32
    %c0_i32_0 = arith.constant 0 : i32
    %c0_i32_1 = arith.constant 0 : i32
    return %arg1, %c0_i32, %c0_i32_0 : i32, i32, i32
  }
  func.func @transform_4(%arg0: i32, %arg1: i32) -> (i32, i32, i32) {
    %c0_i32 = arith.constant 0 : i32
    %c0_i32_0 = arith.constant 0 : i32
    %c0_i32_1 = arith.constant 0 : i32
    return %arg1, %c0_i32, %c0_i32_0 : i32, i32, i32
  }
  func.func @transform_5(%arg0: i32, %arg1: i32) -> (i32, i32, i32) {
    %c0_i32 = arith.constant 0 : i32
    %c0_i32_0 = arith.constant 0 : i32
    %c0_i32_1 = arith.constant 0 : i32
    return %arg1, %c0_i32, %c0_i32_0 : i32, i32, i32
  }
  func.func @transform_6(%arg0: i32, %arg1: i32) -> (i32, i32, i32) {
    %c0_i32 = arith.constant 0 : i32
    %c0_i32_0 = arith.constant 0 : i32
    %c0_i32_1 = arith.constant 0 : i32
    return %arg1, %c0_i32, %c0_i32_0 : i32, i32, i32
  }
  func.func @transform_7(%arg0: i32, %arg1: i32) -> (i32, i32, i32) {
    %c0_i32 = arith.constant 0 : i32
    %c0_i32_0 = arith.constant 0 : i32
    %c0_i32_1 = arith.constant 0 : i32
    return %arg1, %c0_i32, %c0_i32_0 : i32, i32, i32
  }
  func.func @transform_8(%arg0: i32, %arg1: i32) -> (i32, i32, i32) {
    %c0_i32 = arith.constant 0 : i32
    %c0_i32_0 = arith.constant 0 : i32
    %c0_i32_1 = arith.constant 0 : i32
    return %arg1, %c0_i32, %c0_i32_0 : i32, i32, i32
  }
  func.func @transform_9(%arg0: i32, %arg1: i32) -> (i32, i32, i32) {
    %c0_i32 = arith.constant 0 : i32
    %c0_i32_0 = arith.constant 0 : i32
    %c0_i32_1 = arith.constant 0 : i32
    return %arg1, %c0_i32, %c0_i32_0 : i32, i32, i32
  }
  func.func @transform_10(%arg0: i32, %arg1: i32) -> (i32, i32, i32) {
    %c0_i32 = arith.constant 0 : i32
    %c0_i32_0 = arith.constant 0 : i32
    %c0_i32_1 = arith.constant 0 : i32
    return %arg1, %c0_i32, %c0_i32_0 : i32, i32, i32
  }
  func.func @transform_11(%arg0: i32, %arg1: i32) -> (i32, i32, i32) {
    %c0_i32 = arith.constant 0 : i32
    %c0_i32_0 = arith.constant 0 : i32
    %c0_i32_1 = arith.constant 0 : i32
    return %arg1, %c0_i32, %c0_i32_0 : i32, i32, i32
  }
  func.func @transform_12(%arg0: i32, %arg1: i32) -> (i32, i32, i32) {
    %c0_i32 = arith.constant 0 : i32
    %c0_i32_0 = arith.constant 0 : i32
    %c0_i32_1 = arith.constant 0 : i32
    return %arg1, %c0_i32, %c0_i32_0 : i32, i32, i32
  }
  func.func @transform_13(%arg0: i32, %arg1: i32) -> (i32, i32, i32) {
    %c0_i32 = arith.constant 0 : i32
    %c0_i32_0 = arith.constant 0 : i32
    %c0_i32_1 = arith.constant 0 : i32
    return %arg1, %c0_i32, %c0_i32_0 : i32, i32, i32
  }
  func.func @transform_14(%arg0: i32, %arg1: i32) -> (i32, i32, i32) {
    %c0_i32 = arith.constant 0 : i32
    %c0_i32_0 = arith.constant 0 : i32
    %c0_i32_1 = arith.constant 0 : i32
    return %arg1, %c0_i32, %c0_i32_0 : i32, i32, i32
  }
  func.func @transform_15(%arg0: i32, %arg1: i32) -> (i32, i32) {
    %c0_i32 = arith.constant 0 : i32
    %c0_i32_0 = arith.constant 0 : i32
    %c0_i32_1 = arith.constant 0 : i32
    return %c0_i32, %c0_i32_0 : i32, i32
  }
  func.func @transform_16(%arg0: i32, %arg1: i32) -> (i32, i32) {
    %c0_i32 = arith.constant 0 : i32
    %c0_i32_0 = arith.constant 0 : i32
    %c0_i32_1 = arith.constant 0 : i32
    return %c0_i32, %c0_i32_0 : i32, i32
  }
  func.func @transform_17(%arg0: i32, %arg1: i32) -> (i32, i32) {
    %c0_i32 = arith.constant 0 : i32
    %c0_i32_0 = arith.constant 0 : i32
    %c0_i32_1 = arith.constant 0 : i32
    return %c0_i32, %c0_i32_0 : i32, i32
  }
  func.func @transform_18(%arg0: i32, %arg1: i32) -> (i32, i32, i32) {
    %c0_i32 = arith.constant 0 : i32
    %c0_i32_0 = arith.constant 0 : i32
    %c0_i32_1 = arith.constant 0 : i32
    return %arg0, %c0_i32, %c0_i32_0 : i32, i32, i32
  }
}

</mosaic_0001>

<bundles_post_ra>
// kernel: tpu_custom_call.1
= control target key start
LH: loop header
LB: loop body
LE: loop exit
PB: predicated region body
PF: predicated region fallthrough
CT: control target
= control target key end

     0   :  { %s5304_s0 = inlined_call_operand.vmem [shape: f32[2,8,32], index: 0, kind: input, shape index: {}]   ;;  %s5305_s1 = inlined_call_operand.vmem [shape: f32[8,32], index: 1, kind: input, shape index: {}]   ;;  %s5306_s2 = inlined_call_operand.vmem [shape: bf16[2,32,96], index: 2, kind: input, shape index: {}]   ;;  %s5307_s3 = inlined_call_operand.vmem [shape: f32[2,1,96], index: 3, kind: input, shape index: {}]   ;;  %s5308_s4 = inlined_call_operand.vmem [shape: bf16[2,32,32], index: 4, kind: input, shape index: {}]   ;;  %s5309_s5 = inlined_call_operand.vmem [shape: f32[2,1,32], index: 5, kind: input, shape index: {}]   ;;  %s5310_s6 = inlined_call_operand.vmem [shape: bf16[2,32,2048], index: 6, kind: input, shape index: {}]   ;;  %s5311_s7 = inlined_call_operand.vmem [shape: f32[2,1,2048], index: 7, kind: input, shape index: {}]   ;;  %s5312_s8 = inlined_call_operand.vmem [shape: bf16[2,2048,32], index: 8, kind: input, shape index: {}]   ;;  %s5313_s9 = inlined_call_operand.vmem [shape: f32[2,1,32], index: 9, kind: input, shape index: {}]   ;;  %s5314_s10 = inlined_call_operand.vmem [shape: f32[2,1,32], index: 10, kind: input, shape index: {}]   ;;  %s5315_s11 = inlined_call_operand.vmem [shape: f32[2,1,32], index: 11, kind: input, shape index: {}]   ;;  %s5316_s12 = inlined_call_operand.vmem [shape: f32[2,1,32], index: 12, kind: input, shape index: {}]   ;;  %s5317_s13 = inlined_call_operand.vmem [shape: f32[2,1,32], index: 13, kind: input, shape index: {}]   ;;  %s5318_s14 = inlined_call_operand.vmem [shape: bf16[2,32,32], index: 14, kind: input, shape index: {}]   ;;  %s5319_s15 = inlined_call_operand.vmem [shape: f32[1,32], index: 15, kind: input, shape index: {}]   ;;  %s5320_s16 = inlined_call_operand.vmem [shape: f32[1,32], index: 16, kind: input, shape index: {}]   ;;  %s5321_s17 = inlined_call_operand.vmem [shape: f32[1,32], index: 17, kind: input, shape index: {}]   ;;  %s5322_s18 = inlined_call_operand.hbm [shape: f32[2,8,32], index: 18, kind: output, shape index: {}]  }
   0x1   :  { %5338 = sst [smem:[#allocation19_spill]] %s5304_s0 }
   0x2   :  { %5339 = sst [smem:[#allocation20_spill]] %s5305_s1 }
   0x3   :  { %5340 = sst [smem:[#allocation21_spill]] %s5306_s2 }
   0x4   :  { %5341 = sst [smem:[#allocation22_spill]] %s5319_s15 }
   0x5   :  { %5342 = sst [smem:[#allocation23_spill]] %s5320_s16 }
   0x6   :  { %5343 = sst [smem:[#allocation24_spill]] %s5321_s17 }
   0x7   :  { %5344 = sst [smem:[#allocation25_spill]] %s5322_s18 }
   0x8   :  { %23 = vsyncpa [#allocation4], 0 }
   0x9   :  { %25 = vsyncpa [#allocation4 + $0x1], 0  ;;  %s4732_s27 = smov 0   ;;  %s4734_s28 = smov 0  }
   0xa   :  { %s4736_s29 = smov 0   ;;  %s4738_s30 = smov 0  }
   0xb   :  { %s4740_s0 = smov 0   ;;  %s4742_s19 = smov 0  }
   0xc   :  { %s4744_s1 = smov 0   ;;  %s4746_s20 = smov 0  }
   0xd LB: > { %5345 = sst [smem:[#allocation6_spill]] %s4588_s27  ;;  %s3782_s21 = sadd.s32 4294967295, %s4616_s20   ;;  %s4616_s20 = sphi %s4746_s20, %s31_s20   ;;  %s4612_s1 = sphi %s4744_s1, %s5382_s1   ;;  %s4608_s19 = sphi %s4742_s19, %s5381_s19   ;;  %s4604_s0 = sphi %s4740_s0, %s5380_s0   ;;  %s4600_s30 = sphi %s4738_s30, %s5379_s30   ;;  %s4596_s29 = sphi %s4736_s29, %s5378_s29   ;;  %s4592_s28 = sphi %s4734_s28, %s5377_s28   ;;  %s4588_s27 = sphi %s4732_s27, %s5376_s27  }
   0xe   : > { %5346 = sst [smem:[#allocation7_spill]] %s4592_s28  ;;  %s3783_s22 = sadd.s32 4294967294, %s4616_s20  }
   0xf   : > { %5347 = sst [smem:[#allocation8_spill]] %s4596_s29  ;;  %s40_s2 = sadd.s32 1, %s4608_s19 }
  0x10   : > { %5348 = sst [smem:[#allocation9_spill]] %s4600_s30  ;;  %p41_p0 = scmp.ge.s32.totalorder %s40_s2, 2 }
  0x11   : > { %5349 = sst [smem:[#allocation10_spill]] %s4604_s0  ;;  %s43_s23 = sadd.s32 1, %s4612_s1 }
  0x12   : > { %5350 = sst [smem:[#allocation11_spill]] %s4608_s19  ;;  %p508_p1 = scmp.ne.s32.totalorder %s4596_s29, %s4592_s28 }
  0x13   : > { %5351 = sst [smem:[#allocation12_spill]] %s4612_s1  ;;  %p509_p2 = scmp.eq.s32.totalorder %s3782_s21, 3 }
  0x14   : > { %5352 = sst [smem:[#allocation13_spill]] %s4616_s20  ;;  %s5384_s2 = smov (%p41_p0, %s40_s2), 0 }
  0x15   : > { %5353 = sst [smem:[#allocation14_spill]] %s5384_s2  ;;  %s5386_s23 = smov (!%p41_p0, %s43_s23), %s4612_s1 }
  0x16   : > { %p4781_p3 = por %p509_p2, %p508_p1  ;;  %p514_p4 = scmp.ne.s32.totalorder %s4592_s28, %s4588_s27 }
  0x17   : > { %p45_p5 = scmp.ge.s32.totalorder %s5386_s23, 2  ;;  %p515_p6 = scmp.eq.s32.totalorder %s3783_s22, 3 }
  0x18   : > { %s5354_s24 = scalar_select %p4781_p3, 1, 0 }
  0x19   : > { %p3786_p7 = scmp.ge.s32.totalorder %s4616_s20, 1  ;;  %p641_p8 = scmp.lt.s32.totalorder %s4616_s20, 5 }
  0x1a   : > { %5355 = sst [smem:[#allocation15_spill]] %s5354_s24  ;;  %s5388_s23 = smov (%p45_p5, %s5386_s23), 0 }
  0x1b   : > { %5356 = sst [smem:[#allocation16_spill]] %s5388_s23  ;;  %p4791_p9 = por %p515_p6, %p514_p4 }
  0x1c   : > { %p642_p10 = pnand %p3786_p7, %p641_p8  ;;  %s495_s26 = ssub.s32 %s4612_s1, %s5388_s23 }
  0x1d   : > { %s5357_s25 = scalar_select %p4791_p9, 1, 0 }
  0x1e   : > { %s498_s21 = sadd.s32 1, %s4596_s29  ;;  %p496_p11 = scmp.eq.s32.totalorder %s495_s26, 0 }
  0x1f   : > { %5358 = sst [smem:[#allocation17_spill]] %s5357_s25  ;;  %645 = sbr.rel (%p642_p10) target bundleno = 3126 (0xc36), region = 92 }
  0x20   : > { %s4799_s2 = scalar_select %p496_p11, %s4596_s29, %s498_s21  }
  0x21   : > { %s5324_s22 = sand.u32 (!%p642_p10), 1, %s4592_s28   ;;  %p748_p12 = scmp.lt.s32.totalorder (!%p642_p10), %s4600_s30, 1 }
  0x22   : > { %5359 = sst [smem:[#allocation18_spill]] %s4799_s2  ;;  %s4805_s19 = sshll.u32 (!%p642_p10), %s5324_s22, 3 }
  0x23   : > { %p744_p13 = scmp.lt.s32.totalorder (!%p642_p10), %s4604_s0, 1  ;;  %s5360_s2 = sld [smem:[#allocation21_spill]] (!%p642_p10) }
  0x24   : > { %v4618_v0 = vmov 0.0   ;;  %vm4619_vm0 = vmmov 0   ;;  %s4815_s26 = scalar_select %p748_p12, %s4600_s30, 1  ;;  %vm826_vm1 = vcmask 261120   ;;  %vm876_vm2 = vcmask 64512  }
  0x25   : > { %4207 = vmatprep.subr.bf16.mxu0 %v4618_v0  ;;  %4211 = vmatprep.mubr.msk.bf16.mxu0 %vm4619_vm0, %v4618_v0  ;;  %s745_s21 = scalar_select %p744_p13, %s4604_s0, 1  ;;  %vm940_vm3 = vcmask 1043456   ;;  %vm1328_vm4 = vcmask 130048   ;;  %vm1330_vm5 = vcmask 195584  }
  0x26   : > { %4215 = vmatprep.subr.bf16.mxu1 %v4618_v0  ;;  %4217 = vmatprep.mubr.msk.bf16.mxu1 %vm4619_vm0, %v4618_v0  ;;  %s4819_s22 = sshll.u32 %s4815_s26, 4  ;;  %s4004_s25 = sshll.u32 %s4815_s26, 10 }
  0x27   : > { %s4829_s18 = scalar_lea.vmem %s5312_s8, %s4004_s25  ;;  %s3788_s24 = sshll.u32 %s745_s21, 3 }
  0x28   : > { %s5361_s16 = sld [smem:[#allocation20_spill]]  ;;  %s755_s17 = scalar_lea.vmem %s5307_s3, %s4815_s26 }
  0x29   : > { %s752_s29 = scalar_lea.vmem %s5360_s2, %s4819_s22  ;;  %s5362_s30 = sld [smem:[#allocation19_spill]]  ;;  %v3800_v7 = vld [vmem:[%s755_s17] ss:$0 sm:$0xff] }
  0x2a   : > { %v4368_v1 = vld [vmem:[%s752_s29 + $0x8] sm:$0xff]   ;;  %v4369_v3 = vld [vmem:[%s752_s29] sm:$0xff]   ;;  %s4620_s27 = smov 96   ;;  %s4621_s28 = smov 120  }
  0x2b   : > { %4208 = vmatpush3.bf16.msra.mxu0 %v4368_v1  ;;  %s4622_s29 = smov 88   ;;  %s4624_s0 = smov 112  }
  0x2c   : > { %4209 = vmatprep.subr.bf16.mxu0 %v4618_v0  ;;  %s4625_s20 = smov 72   ;;  %s4626_s2 = smov 104  }
  0x2d   : > { %s4627_s23 = smov 56   ;;  %s4629_s25 = smov 40  }
  0x2e   : > { %v800_v2 = vld [vmem:[%s5361_s16] sm:$0xff]  ;;  %s4630_s21 = smov 48   ;;  %s760_s17 = scalar_lea.vmem %s5308_s4, %s4819_s22 }
  0x2f   : > { %s747_s1 = scalar_lea.vmem %s5362_s30, %s3788_s24  ;;  %4210 = vmatpush3.bf16.msra.mxu0 %v4369_v3  ;;  %s4623_s30 = smov 80  }
  0x30   : > { %v799_v4 = vld [vmem:[%s747_s1] sm:$0xff]  ;;  %4221 = vmatprep.subr.bf16.mxu0 %v4618_v0  ;;  %s4628_s24 = smov 64   ;;  %s4631_s1 = smov 8  }
  0x31   : > { %v4838_v5 = vadd.f32 %v800_v2, %v799_v4  ;;  %s792_s15 = scalar_lea.vmem %s5317_s13, %s4815_s26 }
  0x33   : > { %v806_v6 = vpack.c.bf16 %v4838_v5, %v4838_v5 }
  0x35   : > { %4212 = vmatmul.mubr.msk.bf16.vlgmr.msra.gmra.mxu0 %vm826_vm1, %v806_v6 }
  0x36   : > { %4223 = vmatprep.mubr.msk.bf16.mxu0 %vm4619_vm0, %v4618_v0 }
  0xf5   : > { %v864_v8 = vpop.f32.mrf.mxu0 }
  0xf6   : > { %v865_v9 = vadd.f32 %v3800_v7, %v864_v8 }
  0xf7   : > { %v4213_v10 = vpop.f32.mrf.mxu0 }
  0xf8   : > { %v870_v11 = vmul.f32 0.35355338, %v865_v9  ;;  %v4850_v12 = vpack.c.bf16 %v865_v9, %v865_v9 }
  0xf9   : > { %v867_v13 = vpop.f32.mrf.mxu0 }
  0xfa   : > { %v871_v14 = vpack.c.bf16 %v870_v11, %v870_v11  ;;  %874 = vrot.lane.b32.xlu0 %v4850_v12, %s4620_s27  ;;  %s4632_s27 = smov 16  }
  0xfb   : > { %v4214_v15 = vpop.f32.mrf.mxu0 }
  0xfc   : > { %985 = vrot.lane.b32.xlu1 %v871_v14, %s4621_s28  ;;  %s4633_s28 = smov 24  }
  0xfe   : > { %987 = vrot.lane.b32.xlu0 %v4850_v12, %s4622_s29  ;;  %s772_s29 = scalar_lea.vmem %s5311_s7, %s4819_s22 }
 0x100   : > { %1097 = vrot.lane.b32.xlu1 %v4850_v12, %s4623_s30 }
 0x102   : > { %1095 = vrot.lane.b32.xlu0 %v871_v14, %s4624_s0  ;;  %s763_s0 = scalar_lea.vmem %s5309_s5, %s4815_s26 }
 0x104   : > { %1207 = vrot.lane.b32.xlu1 %v4850_v12, %s4625_s20  ;;  %s4003_s20 = sshll.u32 %s4815_s26, 8 }
 0x106   : > { %1205 = vrot.lane.b32.xlu0 %v871_v14, %s4626_s2 }
 0x16c   : > { %v875_v16 = vpop.permute.xlu0 %874 }
 0x16d   : > { %v881_v17 = vsel %vm876_vm2, %v875_v16, 0 }
 0x16e   : > { %4216 = vmatpush3.bf16.xpose.msra.mxu1 %v881_v17  ;;  %v986_v19 = vpop.permute.xlu1 %985 }
 0x16f   : > { %4227 = vmatprep.subr.bf16.mxu1 %v4618_v0 }
 0x170   : > { %v988_v18 = vpop.permute.xlu0 %987 }
 0x171   : > { %v993_v20 = vsel %vm876_vm2, %v988_v18, 0 }
 0x172   : > { %v1098_v21 = vpop.permute.xlu1 %1097 }
 0x173   : > { %v1103_v22 = vsel %vm876_vm2, %v1098_v21, 0 }
 0x174   : > { %v1096_v24 = vpop.permute.xlu0 %1095 }
 0x175   : > { %4218 = vmatmul.mubr.msk.bf16.vlgmr.msra.gmra.mxu1 %vm876_vm2, %v871_v14 }
 0x176   : > { %4228 = vmatpush3.bf16.xpose.msra.mxu1 %v993_v20  ;;  %4229 = vmatprep.mubr.msk.bf16.mxu1 %vm4619_vm0, %v4618_v0  ;;  %v1208_v23 = vpop.permute.xlu1 %1207 }
 0x177   : > { %4239 = vmatprep.subr.bf16.mxu1 %v4618_v0  ;;  %v1213_v25 = vsel %vm876_vm2, %v1208_v23, 0 }
 0x178   : > { %v1206_v26 = vpop.permute.xlu0 %1205 }
 0x17d   : > { %4230 = vmatmul.mubr.msk.bf16.vlgmr.msra.gmra.mxu1 %vm876_vm2, %v986_v19 }
 0x17e   : > { %4240 = vmatpush3.bf16.xpose.msra.mxu1 %v1103_v22  ;;  %4241 = vmatprep.mubr.msk.bf16.mxu1 %vm4619_vm0, %v4618_v0 }
 0x17f   : > { %4251 = vmatprep.subr.bf16.mxu1 %v4618_v0 }
 0x185   : > { %4242 = vmatmul.mubr.msk.bf16.vlgmr.msra.gmra.mxu1 %vm876_vm2, %v1096_v24 }
 0x186   : > { %4252 = vmatpush3.bf16.xpose.msra.mxu1 %v1213_v25  ;;  %4253 = vmatprep.mubr.msk.bf16.mxu1 %vm4619_vm0, %v4618_v0 }
 0x187   : > { %4263 = vmatprep.subr.bf16.mxu1 %v4618_v0 }
 0x18d   : > { %4254 = vmatmul.mubr.msk.bf16.vlgmr.msra.gmra.mxu1 %vm876_vm2, %v1206_v26 }
 0x18e   : > { %4267 = vmatprep.mubr.msk.bf16.mxu1 %vm4619_vm0, %v4618_v0 }
 0x235   : > { %v917_v27 = vpop.f32.mrf.mxu1 }
 0x236   : > { %v923_v28 = vsel %vm876_vm2, %v917_v27, -inf }
 0x237   : > { %924 = vmax.xlane.f32.xlu1 %v923_v28  ;;  %v4219_v29 = vpop.f32.mrf.mxu1 }
 0x239   : > { %v920_v30 = vpop.f32.mrf.mxu1 }
 0x23b   : > { %v4220_v31 = vpop.f32.mrf.mxu1 }
 0x23d   : > { %v1029_v32 = vpop.f32.mrf.mxu1 }
 0x23e   : > { %v1035_v33 = vsel %vm876_vm2, %v1029_v32, -inf }
 0x23f   : > { %1036 = vmax.xlane.f32.xlu0 %v1035_v33  ;;  %v4231_v34 = vpop.f32.mrf.mxu1 }
 0x241   : > { %v1032_v35 = vpop.f32.mrf.mxu1 }
 0x243   : > { %v4232_v36 = vpop.f32.mrf.mxu1 }
 0x245   : > { %v1139_v37 = vpop.f32.mrf.mxu1 }
 0x246   : > { %v1145_v38 = vsel %vm876_vm2, %v1139_v37, -inf }
 0x247   : > { %1146 = vmax.xlane.f32.xlu0 %v1145_v38  ;;  %v4243_v39 = vpop.f32.mrf.mxu1  ;;  %v4371_v38 = vld [vmem:[%s760_s17] sm:$0xff]  }
 0x249   : > { %v1142_v40 = vpop.f32.mrf.mxu1 }
 0x24b   : > { %v4244_v41 = vpop.f32.mrf.mxu1 }
 0x24d   : > { %v1249_v42 = vpop.f32.mrf.mxu1 }
 0x24e   : > { %v1255_v43 = vsel %vm876_vm2, %v1249_v42, -inf }
 0x24f   : > { %1256 = vmax.xlane.f32.xlu1 %v1255_v43  ;;  %v4255_v44 = vpop.f32.mrf.mxu1 }
 0x251   : > { %v1252_v45 = vpop.f32.mrf.mxu1 }
 0x253   : > { %v4256_v46 = vpop.f32.mrf.mxu1 }
 0x2c0   : > { %v925_v47 = vpop.xlane.xlu1 %924 }
 0x2c1   : > { %v926_v48 = vsub.f32 %v917_v27, %v925_v47 }
 0x2c3   : > { %v927_v49 = vmul.f32 1.442695, %v926_v48 }
 0x2c5   : > { %4502 = vpow2.f32 %v927_v49 }
 0x2c8   : > { %v1037_v50 = vpop.xlane.xlu0 %1036 }
 0x2c9   : > { %v1038_v51 = vsub.f32 %v1029_v32, %v1037_v50 }
 0x2cb   : > { %v1039_v52 = vmul.f32 1.442695, %v1038_v51 }
 0x2cd   : > { %4504 = vpow2.f32 %v1039_v52 }
 0x2d0   : > { %v1147_v53 = vpop.xlane.xlu0 %1146 }
 0x2d1   : > { %v1148_v54 = vsub.f32 %v1139_v37, %v1147_v53  ;;  %v4370_v37 = vld [vmem:[%s760_s17 + $0x8] sm:$0xff]   ;;  %s786_s17 = scalar_lea.vmem %s5315_s11, %s4815_s26 }
 0x2d2   : > { %v4503_v55 = vpop.eup %4502  ;;  %4264 = vmatpush3.bf16.msra.mxu1 %v4370_v37 }
 0x2d3   : > { %v1149_v56 = vmul.f32 1.442695, %v1148_v54  ;;  %v929_v57 = vsel %vm876_vm2, %v4503_v55, 0.0  ;;  %4265 = vmatprep.subr.bf16.mxu1 %v4618_v0  ;;  %v3812_v54 = vld [vmem:[%s763_s0] ss:$0 sm:$0xff] }
 0x2d4   : > { %930 = vadd.xlane.f32.xlu0 %v929_v57 }
 0x2d5   : > { %4506 = vpow2.f32 %v1149_v56 }
 0x2d6   : > { %4266 = vmatpush3.bf16.msra.mxu1 %v4371_v38 }
 0x2d8   : > { %v1257_v62 = vpop.xlane.xlu1 %1256 }
 0x2d9   : > { %v1258_v63 = vsub.f32 %v1249_v42, %v1257_v62 }
 0x2da   : > { %v4505_v58 = vpop.eup %4504 }
 0x2db   : > { %v1041_v59 = vsel %vm876_vm2, %v4505_v58, 0.0  ;;  %v1259_v1 = vmul.f32 1.442695, %v1258_v63 }
 0x2dc   : > { %1042 = vadd.xlane.f32.xlu1 %v1041_v59 }
 0x2dd   : > { %4508 = vpow2.f32 %v1259_v1 }
 0x2e2   : > { %v4507_v60 = vpop.eup %4506 }
 0x2e3   : > { %v1151_v61 = vsel %vm876_vm2, %v4507_v60, 0.0 }
 0x2e4   : > { %1152 = vadd.xlane.f32.xlu0 %v1151_v61 }
 0x2ea   : > { %v4509_v2 = vpop.eup %4508 }
 0x2eb   : > { %v1261_v3 = vsel %vm876_vm2, %v4509_v2, 0.0 }
 0x2ed   : > { %1047 = vrot.lane.b32.xlu1 %v4850_v12, %s4627_s23  ;;  %s797_s23 = scalar_lea.vmem %s5318_s14, %s4819_s22  ;;  %s743_s22 = scalar_lea.vmem [#allocation3], %s4805_s19 }
 0x2fa   : > { %935 = vrot.lane.b32.xlu0 %v4850_v12, %s4628_s24  ;;  %s4923_s24 = scalar_lea.vmem %s5310_s6, %s4003_s20  ;;  %s780_s20 = scalar_lea.vmem %s5313_s9, %s4815_s26 }
 0x2fb   : > { %v1432_v38 = vld [vmem:[%s4923_s24 + $0x10] sm:$0xff] }
 0x2fe   : > { %1267 = vrot.lane.b32.xlu0 %v4850_v12, %s4629_s25 }
 0x311   : > { %1262 = vadd.xlane.f32.xlu1 %v1261_v3 }
 0x322   : > { %1157 = vrot.lane.b32.xlu1 %v4850_v12, %s4630_s21  ;;  %s789_s21 = scalar_lea.vmem %s5316_s12, %s4815_s26 }
 0x35d   : > { %v931_v4 = vpop.xlane.xlu0 %930 }
 0x35e   : > { %4510 = vrcp.f32 %v931_v4  ;;  %v1446_v4 = vld [vmem:[%s4923_s24 + $0x80] sm:$0xff] }
 0x365   : > { %v1043_v6 = vpop.xlane.xlu1 %1042 }
 0x366   : > { %4512 = vrcp.f32 %v1043_v6  ;;  %v1454_v6 = vld [vmem:[%s4923_s24 + $0xc0] sm:$0xff] }
 0x369   : > { %v1048_v13 = vpop.permute.xlu1 %1047 }
 0x36a   : > { %v1053_v16 = vsel %vm940_vm3, %v1048_v13, 0 }
 0x36b   : > { %v4511_v7 = vpop.eup %4510 }
 0x36c   : > { %v933_v9 = vmul.f32 %v4511_v7, %v4503_v55  ;;  %v1447_v7 = vld [vmem:[%s4923_s24 + $0x88] sm:$0xff] }
 0x36d   : > { %v1153_v8 = vpop.xlane.xlu0 %1152 }
 0x36e   : > { %v934_v14 = vpack.c.bf16 %v933_v9, %v933_v9  ;;  %4514 = vrcp.f32 %v1153_v8  ;;  %v3835_v8 = vcombine.high %v1446_v4, %v1454_v6  ;;  %v1455_v9 = vld [vmem:[%s4923_s24 + $0xc8] sm:$0xff] }
 0x36f   : > { %v3837_v13 = vcombine.high %v1447_v7, %v1455_v9 }
 0x371   : > { %v936_v10 = vpop.permute.xlu0 %935  ;;  %1763 = vmatprep.subr.bf16.mxu1 %v3837_v13 }
 0x372   : > { %v942_v11 = vsel %vm940_vm3, %v936_v10, 0  ;;  %v3834_v10 = vcombine.low %v1446_v4, %v1454_v6 }
 0x373   : > { %4222 = vmatpush3.bf16.msra.mxu0 %v942_v11  ;;  %v4513_v15 = vpop.eup %4512  ;;  %v3836_v11 = vcombine.low %v1447_v7, %v1455_v9  ;;  %v1444_v9 = vld [vmem:[%s4923_s24 + $0x70] sm:$0xff] }
 0x374   : > { %4233 = vmatprep.subr.bf16.mxu0 %v4618_v0  ;;  %v1045_v12 = vmul.f32 %v4513_v15, %v4505_v58  ;;  %v1438_v15 = vld [vmem:[%s4923_s24 + $0x40] sm:$0xff] }
 0x375   : > { %v1268_v23 = vpop.permute.xlu0 %1267 }
 0x376   : > { %4224 = vmatmul.mubr.msk.bf16.vlgmr.msra.gmra.mxu0 %vm876_vm2, %v934_v14  ;;  %v1046_v17 = vpack.c.bf16 %v1045_v12, %v1045_v12  ;;  %v1273_v25 = vsel %vm940_vm3, %v1268_v23, 0  ;;  %v1430_v14 = vld [vmem:[%s4923_s24] sm:$0xff]  ;;  %v1449_v23 = vld [vmem:[%s4923_s24 + $0x98] sm:$0xff] }
 0x377   : > { %4234 = vmatpush3.bf16.msra.mxu0 %v1053_v16  ;;  %4235 = vmatprep.mubr.msk.bf16.mxu0 %vm4619_vm0, %v4618_v0  ;;  %v1431_v16 = vld [vmem:[%s4923_s24 + $0x8] sm:$0xff]  ;;  %v3819_v12 = vcombine.high %v1430_v14, %v1438_v15 }
 0x378   : > { %4245 = vmatprep.subr.bf16.mxu0 %v4618_v0 }
 0x37b   : > { %v4515_v18 = vpop.eup %4514 }
 0x37c   : > { %v1155_v20 = vmul.f32 %v4515_v18, %v4507_v60  ;;  %v3818_v18 = vcombine.low %v1430_v14, %v1438_v15 }
 0x37e   : > { %4236 = vmatmul.mubr.msk.bf16.vlgmr.msra.gmra.mxu0 %vm876_vm2, %v1046_v17  ;;  %v1156_v24 = vpack.c.bf16 %v1155_v20, %v1155_v20  ;;  %v1439_v17 = vld [vmem:[%s4923_s24 + $0x48] sm:$0xff] }
 0x37f   : > { %4247 = vmatprep.mubr.msk.bf16.mxu0 %vm4619_vm0, %v4618_v0  ;;  %v3821_v20 = vcombine.high %v1431_v16, %v1439_v17 }
 0x39a   : > { %v1263_v19 = vpop.xlane.xlu1 %1262 }
 0x39b   : > { %4516 = vrcp.f32 %v1263_v19  ;;  %v3820_v19 = vcombine.low %v1431_v16, %v1439_v17 }
 0x39e   : > { %v1158_v21 = vpop.permute.xlu1 %1157 }
 0x39f   : > { %v1163_v22 = vsel %vm940_vm3, %v1158_v21, 0  ;;  %v1448_v21 = vld [vmem:[%s4923_s24 + $0x90] sm:$0xff] }
 0x3a0   : > { %4246 = vmatpush3.bf16.msra.mxu0 %v1163_v22  ;;  %v1456_v22 = vld [vmem:[%s4923_s24 + $0xd0] sm:$0xff] }
 0x3a1   : > { %4257 = vmatprep.subr.bf16.mxu0 %v4618_v0 }
 0x3a3   : > { %4248 = vmatmul.mubr.msk.bf16.vlgmr.msra.gmra.mxu0 %vm876_vm2, %v1156_v24  ;;  %v3839_v24 = vcombine.high %v1448_v21, %v1456_v22 }
 0x3a4   : > { %4258 = vmatpush3.bf16.msra.mxu0 %v1273_v25  ;;  %4259 = vmatprep.mubr.msk.bf16.mxu0 %vm4619_vm0, %v4618_v0  ;;  %v1457_v25 = vld [vmem:[%s4923_s24 + $0xd8] sm:$0xff] }
 0x3a5   : > { %1722 = vmatprep.subr.bf16.mxu0 %v3835_v8  ;;  %v1436_v8 = vld [vmem:[%s4923_s24 + $0x30] sm:$0xff] }
 0x3a6   : > { %v3831_v15 = vcombine.high %v1436_v8, %v1444_v9 }
 0x3a8   : > { %v4517_v26 = vpop.eup %4516 }
 0x3a9   : > { %v1265_v27 = vmul.f32 %v4517_v26, %v4509_v2  ;;  %v4634_v26 = vmov 0  }
 0x3ab   : > { %v1266_v28 = vpack.c.bf16 %v1265_v27, %v1265_v27  ;;  %v3838_v27 = vcombine.low %v1448_v21, %v1456_v22  ;;  %v4375_v21 = vld [vmem:[%s4829_s18 + $0xb8] sm:$0xff]   ;;  %v4376_v22 = vld [vmem:[%s4829_s18 + $0x70] sm:$0xff]  }
 0x3ad   : > { %4260 = vmatmul.mubr.msk.bf16.vlgmr.msra.gmra.mxu0 %vm876_vm2, %v1266_v28  ;;  %v3840_v28 = vcombine.low %v1449_v23, %v1457_v25 }
 0x3ae   : > { %1723 = vmatpush1.bf16.msra.mxu0 %v3834_v10  ;;  %1742 = vmatprep.mubr.bf16.mxu0 %v4634_v26  ;;  %v1437_v10 = vld [vmem:[%s4923_s24 + $0x38] sm:$0xff] }
 0x3af   : > { %1724 = vmatprep.subr.bf16.mxu0 %v3819_v12  ;;  %v3830_v12 = vcombine.low %v1436_v8, %v1444_v9 }
 0x3b2   : > { %1725 = vmatpush1.bf16.msra.mxu0 %v3818_v18  ;;  %v4372_v18 = vld [vmem:[%s4829_s18 + $0x78] sm:$0xff]  }
 0x3b3   : > { %1804 = vmatprep.subr.bf16.mxu0 %v3839_v24  ;;  %v4378_v24 = vld [vmem:[%s4829_s18 + $0x30] sm:$0xff]  }
 0x436   : > { %v978_v29 = vpop.f32.mrf.mxu0 }
 0x438   : > { %v4225_v30 = vpop.f32.mrf.mxu0 }
 0x43a   : > { %v981_v31 = vpop.f32.mrf.mxu0 }
 0x43c   : > { %v4226_v32 = vpop.f32.mrf.mxu0 }
 0x43e   : > { %v1089_v33 = vpop.f32.mrf.mxu0 }
 0x43f   : > { %1316 = vrot.lane.b32.xlu1 %v1089_v33, %s4631_s1  ;;  %s783_s1 = scalar_lea.vmem %s5314_s10, %s4815_s26 }
 0x440   : > { %v4237_v34 = vpop.f32.mrf.mxu0 }
 0x441   : > { %v3816_v34 = vld [vmem:[%s783_s1] ss:$0 sm:$0xff] }
 0x442   : > { %v1092_v35 = vpop.f32.mrf.mxu0 }
 0x444   : > { %v4238_v36 = vpop.f32.mrf.mxu0 }
 0x445   : > { %v3817_v36 = vld [vmem:[%s786_s17] ss:$0 sm:$0xff]  ;;  %s5363_s17 = sld [smem:[#allocation9_spill]] }
 0x44b   : > { %p3992_p0 = scmp.ne.s32.totalorder %s5363_s17, 0 }
 0x463   : > { %v1199_v39 = vpop.f32.mrf.mxu0 }
 0x464   : > { %1320 = vrot.lane.b32.xlu0 %v1199_v39, %s4632_s27  ;;  %v1440_v39 = vld [vmem:[%s4923_s24 + $0x50] sm:$0xff] }
 0x465   : > { %v4249_v40 = vpop.f32.mrf.mxu0 }
 0x466   : > { %v1433_v40 = vld [vmem:[%s4923_s24 + $0x18] sm:$0xff] }
 0x467   : > { %v1202_v41 = vpop.f32.mrf.mxu0 }
 0x468   : > { %v1441_v41 = vld [vmem:[%s4923_s24 + $0x58] sm:$0xff] }
 0x469   : > { %v4250_v42 = vpop.f32.mrf.mxu0 }
 0x46d   : > { %v1309_v43 = vpop.f32.mrf.mxu0 }
 0x46e   : > { %1324 = vrot.lane.b32.xlu1 %v1309_v43, %s4633_s28 }
 0x46f   : > { %v4261_v44 = vpop.f32.mrf.mxu0 }
 0x470   : > { %v3823_v44 = vcombine.high %v1432_v38, %v1440_v39 }
 0x471   : > { %v1312_v45 = vpop.f32.mrf.mxu0 }
 0x472   : > { %v3825_v45 = vcombine.high %v1433_v40, %v1441_v41 }
 0x473   : > { %v4262_v46 = vpop.f32.mrf.mxu0 }
 0x474   : > { %v1450_v46 = vld [vmem:[%s4923_s24 + $0xa0] sm:$0xff] }
 0x4b1   : > { %v1317_v47 = vpop.permute.xlu1 %1316 }
 0x4b2   : > { %v1327_v49 = vsel %vm876_vm2, %v978_v29, %v1317_v47  ;;  %v3841_v29 = vcombine.high %v1449_v23, %v1457_v25  ;;  %v1458_v47 = vld [vmem:[%s4923_s24 + $0xe0] sm:$0xff]  ;;  %v4377_v23 = vld [vmem:[%s4829_s18 + $0xf0] sm:$0xff]  }
 0x4b3   : > { %v4379_v25 = vld [vmem:[%s4829_s18 + $0xb0] sm:$0xff]  }
 0x4d6   : > { %v1321_v48 = vpop.permute.xlu0 %1320 }
 0x4d7   : > { %v1329_v50 = vsel %vm1328_vm4, %v1327_v49, %v1321_v48  ;;  %v1451_v48 = vld [vmem:[%s4923_s24 + $0xa8] sm:$0xff] }
 0x4d8   : > { %v1459_v49 = vld [vmem:[%s4923_s24 + $0xe8] sm:$0xff] }
 0x4e0   : > { %v1325_v51 = vpop.permute.xlu1 %1324 }
 0x4e1   : > { %v1331_v52 = vsel %vm1330_vm5, %v1329_v50, %v1325_v51  ;;  %v3822_v50 = vcombine.low %v1432_v38, %v1440_v39  ;;  %v3824_v51 = vcombine.low %v1433_v40, %v1441_v41  ;;  %v4392_v38 = vld [vmem:[%s4829_s18 + $0x50] sm:$0xff]  }
 0x4e2   : > { %v1336_v53 = vpack.c.bf16 %v1331_v52, %v1331_v52  ;;  %v3843_v52 = vcombine.high %v1450_v46, %v1458_v47  ;;  %v4393_v39 = vld [vmem:[%s4829_s18 + $0xd0] sm:$0xff]  }
 0x4e3   : > { %v4394_v40 = vld [vmem:[%s4829_s18 + $0x10] sm:$0xff]  }
 0x4e4   : > { %4268 = vmatmul.mubr.msk.bf16.vlgmr.msra.gmra.mxu1 %vm826_vm1, %v1336_v53  ;;  %v3845_v53 = vcombine.high %v1451_v48, %v1459_v49  ;;  %v4395_v41 = vld [vmem:[%s4829_s18 + $0x90] sm:$0xff]  }
 0x4e5   : > { %1764 = vmatpush1.bf16.msra.mxu1 %v3836_v11  ;;  %1783 = vmatprep.mubr.bf16.mxu1 %v4634_v26  ;;  %v1445_v11 = vld [vmem:[%s4923_s24 + $0x78] sm:$0xff] }
 0x4e6   : > { %1765 = vmatprep.subr.bf16.mxu1 %v3821_v20  ;;  %v3833_v16 = vcombine.high %v1437_v10, %v1445_v11  ;;  %v3832_v17 = vcombine.low %v1437_v10, %v1445_v11  ;;  %v4374_v20 = vld [vmem:[%s4829_s18 + $0x38] sm:$0xff]  }
 0x4e9   : > { %1766 = vmatpush1.bf16.msra.mxu1 %v3820_v19  ;;  %v4373_v19 = vld [vmem:[%s4829_s18 + $0xf8] sm:$0xff]  }
 0x4ea   : > { %1845 = vmatprep.subr.bf16.mxu1 %v3841_v29  ;;  %v4383_v29 = vld [vmem:[%s4829_s18 + $0xa8] sm:$0xff]  }
 0x5a4   : > { %v1393_v55 = vpop.f32.mrf.mxu1 }
 0x5a5   : > { %v1394_v56 = vadd.f32 %v3812_v54, %v1393_v55  ;;  %v1434_v54 = vld [vmem:[%s4923_s24 + $0x20] sm:$0xff] }
 0x5a6   : > { %v4269_v57 = vpop.f32.mrf.mxu1  ;;  %v1442_v55 = vld [vmem:[%s4923_s24 + $0x60] sm:$0xff] }
 0x5a7   : > { %v1399_v58 = vadd.f32 %v1394_v56, %v4838_v5  ;;  %v1435_v56 = vld [vmem:[%s4923_s24 + $0x28] sm:$0xff] }
 0x5a8   : > { %v1396_v59 = vpop.f32.mrf.mxu1  ;;  %v1443_v57 = vld [vmem:[%s4923_s24 + $0x68] sm:$0xff] }
 0x5a9   : > { %v1402_v60 = vsel %vm826_vm1, %v1399_v58, 0.0  ;;  %v3844_v59 = vcombine.low %v1451_v48, %v1459_v49  ;;  %v3828_v4 = vcombine.low %v1435_v56, %v1443_v57  ;;  %v4401_v48 = vld [vmem:[%s4829_s18 + $0xc0] sm:$0xff]  }
 0x5aa   : > { %1403 = vadd.xlane.f32.xlu0 %v1402_v60  ;;  %v4270_v61 = vpop.f32.mrf.mxu1  ;;  %v3827_v60 = vcombine.high %v1434_v54, %v1442_v55  ;;  %v4402_v49 = vld [vmem:[%s4829_s18] sm:$0xff]  }
 0x5ab   : > { %v3829_v61 = vcombine.high %v1435_v56, %v1443_v57  ;;  %v5036_v56 = vld [vmem:[%s772_s29 + $0x8] sm:$0xff] }
 0x633   : > { %v1404_v62 = vpop.xlane.xlu0 %1403 }
 0x634   : > { %v1406_v63 = vmul.f32 0.03125, %v1404_v62  ;;  %v1452_v62 = vld [vmem:[%s4923_s24 + $0xb0] sm:$0xff] }
 0x636   : > { %v1407_v1 = vsub.f32 %v1399_v58, %v1406_v63  ;;  %v3842_v58 = vcombine.low %v1450_v46, %v1458_v47  ;;  %v1460_v63 = vld [vmem:[%s4923_s24 + $0xf0] sm:$0xff]  ;;  %v4399_v46 = vld [vmem:[%s4829_s18 + $0x88] sm:$0xff]   ;;  %v4400_v47 = vld [vmem:[%s4829_s18 + $0x40] sm:$0xff]  }
 0x637   : > { %v3847_v6 = vcombine.high %v1452_v62, %v1460_v63  ;;  %v3846_v13 = vcombine.low %v1452_v62, %v1460_v63 }
 0x638   : > { %v1408_v2 = vmul.f32 %v1407_v1, %v1407_v1 }
 0x63a   : > { %v1409_v3 = vsel %vm826_vm1, %v1408_v2, 0.0  ;;  %v1461_v2 = vld [vmem:[%s4923_s24 + $0xf8] sm:$0xff] }
 0x63b   : > { %1410 = vadd.xlane.f32.xlu1 %v1409_v3  ;;  %v3826_v3 = vcombine.low %v1434_v54, %v1442_v55 }
 0x6c4   : > { %v1411_v30 = vpop.xlane.xlu1 %1410 }
 0x6c5   : > { %v1412_v31 = vmul.f32 0.03125, %v1411_v30  ;;  %v4384_v30 = vld [vmem:[%s4829_s18 + $0x60] sm:$0xff]  }
 0x6c7   : > { %v1413_v32 = vadd.f32 1e-05, %v1412_v31  ;;  %v4385_v31 = vld [vmem:[%s4829_s18 + $0xe0] sm:$0xff]  }
 0x6c9   : > { %4518 = vrsqrt.f32 %v1413_v32  ;;  %v4386_v32 = vld [vmem:[%s4829_s18 + $0x20] sm:$0xff]  }
 0x6d6   : > { %v4519_v33 = vpop.eup %4518 }
 0x6d7   : > { %v1415_v35 = vmul.f32 %v4519_v33, %v1407_v1  ;;  %v1453_v1 = vld [vmem:[%s4923_s24 + $0xb8] sm:$0xff]  ;;  %v4387_v33 = vld [vmem:[%s4829_s18 + $0xa0] sm:$0xff]  }
 0x6d8   : > { %v3849_v7 = vcombine.high %v1453_v1, %v1461_v2  ;;  %v3848_v14 = vcombine.low %v1453_v1, %v1461_v2 }
 0x6d9   : > { %v1422_v37 = vmul.f32 %v3816_v34, %v1415_v35  ;;  %v4388_v34 = vld [vmem:[%s4829_s18 + $0x58] sm:$0xff]  }
 0x6da   : > { %v4389_v35 = vld [vmem:[%s4829_s18 + $0xd8] sm:$0xff]  }
 0x6db   : > { %v4951_v42 = vadd.f32 %v3817_v36, %v1422_v37  ;;  %v4390_v36 = vld [vmem:[%s4829_s18 + $0x18] sm:$0xff]  }
 0x6dc   : > { %v4391_v37 = vld [vmem:[%s4829_s18 + $0x98] sm:$0xff]  }
 0x6dd   : > { %v4955_v43 = vpack.c.bf16 %v4951_v42, %v4951_v42 }
 0x6df   : > { %3850 = vmatmul.mubr.msk.bf16.vlgmr.msra.gmra.mxu0 %vm826_vm1, %v4955_v43  ;;  %3851 = vmatmul.mubr.msk.bf16.vlgmr.msra.gmra.mxu1 %vm826_vm1, %v4955_v43 }
 0x6e0   : > { %1805 = vmatpush1.bf16.msra.mxu0 %v3838_v27  ;;  %1846 = vmatpush1.bf16.msra.mxu1 %v3840_v28  ;;  %v4381_v27 = vld [vmem:[%s4829_s18 + $0xe8] sm:$0xff]  }
 0x6e1   : > { %1806 = vmatprep.subr.bf16.mxu0 %v3823_v44  ;;  %1847 = vmatprep.subr.bf16.mxu1 %v3825_v45  ;;  %v4382_v28 = vld [vmem:[%s4829_s18 + $0x28] sm:$0xff]  }
 0x6e2   : > { %1824 = vmatprep.mubr.bf16.mxu0 %v4634_v26  ;;  %1865 = vmatprep.mubr.bf16.mxu1 %v4634_v26  ;;  %v4397_v44 = vld [vmem:[%s4829_s18 + $0xc8] sm:$0xff]  }
 0x6e3   : > { %v4398_v45 = vld [vmem:[%s4829_s18 + $0x8] sm:$0xff]  }
 0x6e4   : > { %1807 = vmatpush1.bf16.msra.mxu0 %v3822_v50  ;;  %1848 = vmatpush1.bf16.msra.mxu1 %v3824_v51  ;;  %v4403_v50 = vld [vmem:[%s4829_s18 + $0x80] sm:$0xff]   ;;  %v4404_v51 = vld [vmem:[%s4829_s18 + $0x178] sm:$0xff]  }
 0x6e5   : > { %1886 = vmatprep.subr.bf16.mxu0 %v3843_v52  ;;  %1927 = vmatprep.subr.bf16.mxu1 %v3845_v53  ;;  %v4405_v52 = vld [vmem:[%s4829_s18 + $0x1f8] sm:$0xff]   ;;  %v1467_v53 = vlaneseq }
 0x6e7   : > { %3852 = vmatmul.mubr.msk.bf16.vlgmr.msra.gmra.mxu0 %vm826_vm1, %v4955_v43  ;;  %3853 = vmatmul.mubr.msk.bf16.vlgmr.msra.gmra.mxu1 %vm826_vm1, %v4955_v43  ;;  %v5029_v54 = vshrl.u32 %v1467_v53, 7  ;;  %v4415_v53 = vld [vmem:[%s4829_s18 + $0x1a8] sm:$0xff]  }
 0x6e8   : > { %1887 = vmatpush1.bf16.msra.mxu0 %v3842_v58  ;;  %1928 = vmatpush1.bf16.msra.mxu1 %v3844_v59 }
 0x6e9   : > { %1888 = vmatprep.subr.bf16.mxu0 %v3827_v60  ;;  %1929 = vmatprep.subr.bf16.mxu1 %v3829_v61  ;;  %v1493_v55 = vsub.s32 6, %v5029_v54  ;;  %v1469_v58 = vsub.s32 0, %v5029_v54  ;;  %v1477_v59 = vsub.s32 2, %v5029_v54  ;;  %v5045_v60 = vld [vmem:[%s772_s29] sm:$0xff]  ;;  %v1473_v61 = vsub.s32 1, %v5029_v54 }
 0x6ea   : > { %1906 = vmatprep.mubr.bf16.mxu0 %v4634_v26  ;;  %1947 = vmatprep.mubr.bf16.mxu1 %v4634_v26  ;;  %v1481_v62 = vsub.s32 3, %v5029_v54 }
 0x6eb   : > { %v5041_v57 = vrot.slane %v5036_v56, %v1493_v55  ;;  %v1470_v63 = vrot.slane %v5045_v60, %v1469_v58  ;;  %v1478_v1 = vrot.slane %v5045_v60, %v1477_v59  ;;  %v1474_v2 = vrot.slane %v5045_v60, %v1473_v61 }
 0x6ec   : > { %1889 = vmatpush1.bf16.msra.mxu0 %v3826_v3  ;;  %1930 = vmatpush1.bf16.msra.mxu1 %v3828_v4  ;;  %v1482_v3 = vrot.slane %v5045_v60, %v1481_v62 }
 0x6ed   : > { %1968 = vmatprep.subr.bf16.mxu0 %v3847_v6  ;;  %2009 = vmatprep.subr.bf16.mxu1 %v3849_v7 }
 0x6ef   : > { %3854 = vmatmul.mubr.msk.bf16.vlgmr.msra.gmra.mxu0 %vm826_vm1, %v4955_v43  ;;  %3855 = vmatmul.mubr.msk.bf16.vlgmr.msra.gmra.mxu1 %vm826_vm1, %v4955_v43 }
 0x6f0   : > { %1969 = vmatpush1.bf16.msra.mxu0 %v3846_v13  ;;  %2010 = vmatpush1.bf16.msra.mxu1 %v3848_v14  ;;  %v1489_v14 = vsub.s32 5, %v5029_v54 }
 0x6f1   : > { %1970 = vmatprep.subr.bf16.mxu0 %v3831_v15  ;;  %2011 = vmatprep.subr.bf16.mxu1 %v3833_v16  ;;  %v1497_v15 = vsub.s32 7, %v5029_v54 }
 0x6f2   : > { %1988 = vmatprep.mubr.bf16.mxu0 %v4634_v26  ;;  %2029 = vmatprep.mubr.bf16.mxu1 %v4634_v26  ;;  %v4380_v26 = vld [vmem:[%s4829_s18 + $0x68] sm:$0xff]  }
 0x6f4   : > { %1971 = vmatpush1.bf16.msra.mxu0 %v3830_v12  ;;  %2012 = vmatpush1.bf16.msra.mxu1 %v3832_v17 }
 0x6f5   : > { %4028 = vmatprep.subr.bf16.mxu0 %v4372_v18  ;;  %4050 = vmatprep.subr.bf16.mxu1 %v4373_v19 }
 0x6f7   : > { %3856 = vmatmul.mubr.msk.bf16.vlgmr.msra.gmra.mxu0 %vm826_vm1, %v4955_v43  ;;  %3857 = vmatmul.mubr.msk.bf16.vlgmr.msra.gmra.mxu1 %vm826_vm1, %v4955_v43  ;;  %v4396_v43 = vld [vmem:[%s4829_s18 + $0x48] sm:$0xff]  }
 0x6f8   : > { %4029 = vmatpush3.bf16.msra.mxu0 %v4374_v20  ;;  %4051 = vmatpush3.bf16.msra.mxu1 %v4375_v21 }
 0x6f9   : > { %4030 = vmatprep.subr.bf16.mxu0 %v4376_v22  ;;  %4052 = vmatprep.subr.bf16.mxu1 %v4377_v23 }
 0x6fc   : > { %4031 = vmatpush3.bf16.msra.mxu0 %v4378_v24  ;;  %4053 = vmatpush3.bf16.msra.mxu1 %v4379_v25  ;;  %v1490_v25 = vrot.slane %v5045_v60, %v1489_v14 }
 0x6fd   : > { %4032 = vmatprep.subr.bf16.mxu0 %v4380_v26  ;;  %4054 = vmatprep.subr.bf16.mxu1 %v4381_v27  ;;  %v1498_v26 = vrot.slane %v5045_v60, %v1497_v15  ;;  %v4406_v27 = vld [vmem:[%s4829_s18 + $0x138] sm:$0xff]  }
 0x700   : > { %4033 = vmatpush3.bf16.msra.mxu0 %v4382_v28  ;;  %4055 = vmatpush3.bf16.msra.mxu1 %v4383_v29  ;;  %v4407_v28 = vld [vmem:[%s4829_s18 + $0x1b8] sm:$0xff]  }
 0x701   : > { %4034 = vmatprep.subr.bf16.mxu0 %v4384_v30  ;;  %4056 = vmatprep.subr.bf16.mxu1 %v4385_v31 }
 0x704   : > { %4035 = vmatpush3.bf16.msra.mxu0 %v4386_v32  ;;  %4057 = vmatpush3.bf16.msra.mxu1 %v4387_v33  ;;  %v4408_v33 = vld [vmem:[%s4829_s18 + $0x170] sm:$0xff]  }
 0x705   : > { %4036 = vmatprep.subr.bf16.mxu0 %v4388_v34  ;;  %4058 = vmatprep.subr.bf16.mxu1 %v4389_v35  ;;  %v4409_v34 = vld [vmem:[%s4829_s18 + $0x1f0] sm:$0xff]  }
 0x708   : > { %4037 = vmatpush3.bf16.msra.mxu0 %v4390_v36  ;;  %4059 = vmatpush3.bf16.msra.mxu1 %v4391_v37 }
 0x709   : > { %4038 = vmatprep.subr.bf16.mxu0 %v4392_v38  ;;  %4060 = vmatprep.subr.bf16.mxu1 %v4393_v39  ;;  %v4410_v39 = vld [vmem:[%s4829_s18 + $0x130] sm:$0xff]  }
 0x70c   : > { %4039 = vmatpush3.bf16.msra.mxu0 %v4394_v40  ;;  %4061 = vmatpush3.bf16.msra.mxu1 %v4395_v41  ;;  %v4411_v40 = vld [vmem:[%s4829_s18 + $0x1b0] sm:$0xff]  }
 0x70d   : > { %4040 = vmatprep.subr.bf16.mxu0 %v4396_v43  ;;  %4062 = vmatprep.subr.bf16.mxu1 %v4397_v44  ;;  %v4412_v44 = vld [vmem:[%s4829_s18 + $0x168] sm:$0xff]  }
 0x710   : > { %4041 = vmatpush3.bf16.msra.mxu0 %v4398_v45  ;;  %4063 = vmatpush3.bf16.msra.mxu1 %v4399_v46  ;;  %v4413_v45 = vld [vmem:[%s4829_s18 + $0x1e8] sm:$0xff]  }
 0x711   : > { %4042 = vmatprep.subr.bf16.mxu0 %v4400_v47  ;;  %4064 = vmatprep.subr.bf16.mxu1 %v4401_v48 }
 0x714   : > { %4043 = vmatpush3.bf16.msra.mxu0 %v4402_v49  ;;  %4065 = vmatpush3.bf16.msra.mxu1 %v4403_v50 }
 0x715   : > { %4072 = vmatprep.subr.bf16.mxu0 %v4404_v51  ;;  %4094 = vmatprep.subr.bf16.mxu1 %v4405_v52  ;;  %v4414_v52 = vld [vmem:[%s4829_s18 + $0x128] sm:$0xff]  }
 0x79f   : > { %v1744_v4 = vpop.f32.mrf.mxu0  ;;  %v1785_v6 = vpop.f32.mrf.mxu1 }
 0x7a0   : > { %v1745_v7 = vadd.f32 %v1744_v4, %v1470_v63  ;;  %v1786_v8 = vadd.f32 %v1785_v6, %v1478_v1 }
 0x7a1   : > { %v1746_v9 = vpop.f32.mrf.mxu0  ;;  %v1787_v10 = vpop.f32.mrf.mxu1 }
 0x7a2   : > { %v1747_v11 = vadd.f32 %v1746_v9, %v1474_v2  ;;  %v1788_v13 = vadd.f32 %v1787_v10, %v1482_v3  ;;  %v2038_v16 = vmax.f32 %v1745_v7, 0.0  ;;  %v2040_v12 = vmax.f32 %v1786_v8, 0.0  ;;  %v4416_v2 = vld [vmem:[%s4829_s18 + $0x160] sm:$0xff]  }
 0x7a3   : > { %v1748_v17 = vpop.f32.mrf.mxu0  ;;  %v1789_v18 = vpop.f32.mrf.mxu1  ;;  %v4417_v3 = vld [vmem:[%s4829_s18 + $0x1e0] sm:$0xff]   ;;  %v1485_v7 = vsub.s32 4, %v5029_v54 }
 0x7a4   : > { %v2039_v19 = vmax.f32 %v1747_v11, 0.0  ;;  %v2041_v20 = vmax.f32 %v1788_v13, 0.0  ;;  %v2310_v29 = vpack.c.bf16 %v2038_v16, %v2038_v16  ;;  %v2312_v30 = vpack.c.bf16 %v2040_v12, %v2040_v12  ;;  %v4418_v8 = vld [vmem:[%s4829_s18 + $0x120] sm:$0xff]   ;;  %v4420_v13 = vld [vmem:[%s4829_s18 + $0x158] sm:$0xff]  }
 0x7a5   : > { %v1749_v21 = vpop.f32.mrf.mxu0  ;;  %v1790_v22 = vpop.f32.mrf.mxu1  ;;  %v4419_v9 = vld [vmem:[%s4829_s18 + $0x1a0] sm:$0xff]   ;;  %v4421_v16 = vld [vmem:[%s4829_s18 + $0x1d8] sm:$0xff]   ;;  %v1518_v12 = vrot.slane %v5036_v56, %v1485_v7 }
 0x7a6   : > { %v2311_v23 = vpack.c.bf16 %v2039_v19, %v2039_v19  ;;  %v2313_v24 = vpack.c.bf16 %v2041_v20, %v2041_v20  ;;  %v4422_v19 = vld [vmem:[%s4829_s18 + $0x118] sm:$0xff]  }
 0x7a7   : > { %v5071_v31 = vpop.f32.mrf.mxu0  ;;  %v5073_v32 = vpop.f32.mrf.mxu1  ;;  %v4423_v20 = vld [vmem:[%s4829_s18 + $0x198] sm:$0xff]  }
 0x7a8   : > { %3133 = vmatprep.mubr.bf16.mxu0 %v2311_v23  ;;  %3173 = vmatprep.mubr.bf16.mxu1 %v2313_v24  ;;  %v4424_v23 = vld [vmem:[%s4829_s18 + $0x150] sm:$0xff]  }
 0x7a9   : > { %v1828_v35 = vpop.f32.mrf.mxu0  ;;  %v1869_v36 = vpop.f32.mrf.mxu1  ;;  %3134 = vmatmul.mubr.bf16.vlgmr.msra.gmra.mxu0 %v2310_v29  ;;  %3174 = vmatmul.mubr.bf16.vlgmr.msra.gmra.mxu1 %v2312_v30  ;;  %v4425_v24 = vld [vmem:[%s4829_s18 + $0x1d0] sm:$0xff]  }
 0x7aa   : > { %v1829_v37 = vadd.f32 %v1828_v35, %v1490_v25  ;;  %v1870_v38 = vadd.f32 %v1869_v36, %v1498_v26  ;;  %4073 = vmatpush3.bf16.msra.mxu0 %v4406_v27  ;;  %4095 = vmatpush3.bf16.msra.mxu1 %v4407_v28  ;;  %v4426_v29 = vld [vmem:[%s4829_s18 + $0x110] sm:$0xff]  }
 0x7ab   : > { %v1830_v41 = vpop.f32.mrf.mxu0  ;;  %v1871_v43 = vpop.f32.mrf.mxu1  ;;  %4074 = vmatprep.subr.bf16.mxu0 %v4408_v33  ;;  %4096 = vmatprep.subr.bf16.mxu1 %v4409_v34  ;;  %v4427_v30 = vld [vmem:[%s4829_s18 + $0x190] sm:$0xff]   ;;  %v1486_v33 = vrot.slane %v5045_v60, %v1485_v7  ;;  %v1494_v34 = vrot.slane %v5045_v60, %v1493_v55  ;;  %v4430_v55 = vld [vmem:[%s4829_s18 + $0x108] sm:$0xff]  }
 0x7ac   : > { %v2043_v46 = vmax.f32 %v1829_v37, 0.0  ;;  %v2045_v47 = vmax.f32 %v1870_v38, 0.0  ;;  %v4429_v37 = vld [vmem:[%s4829_s18 + $0x1c8] sm:$0xff]   ;;  %v1506_v38 = vrot.slane %v5036_v56, %v1473_v61  ;;  %v4432_v61 = vld [vmem:[%s4829_s18 + $0x140] sm:$0xff]   ;;  %v4440_v7 = vld [vmem:[%s4829_s18 + $0x270] sm:$0xff]  }
 0x7ad   : > { %v1831_v48 = vpop.f32.mrf.mxu0  ;;  %v1872_v49 = vpop.f32.mrf.mxu1  ;;  %v4431_v60 = vld [vmem:[%s4829_s18 + $0x188] sm:$0xff]   ;;  %v1827_v43 = vadd.f32 %v5071_v31, %v1486_v33  ;;  %v4436_v31 = vld [vmem:[%s4829_s18 + $0x278] sm:$0xff]   ;;  %v4457_v33 = vld [vmem:[%s4829_s18 + $0x2d0] sm:$0xff]  }
 0x7ae   : > { %v2315_v50 = vpack.c.bf16 %v2043_v46, %v2043_v46  ;;  %v2317_v51 = vpack.c.bf16 %v2045_v47, %v2045_v47  ;;  %4075 = vmatpush3.bf16.msra.mxu0 %v4410_v39  ;;  %4097 = vmatpush3.bf16.msra.mxu1 %v4411_v40  ;;  %v1514_v39 = vrot.slane %v5036_v56, %v1481_v62  ;;  %v4434_v47 = vld [vmem:[%s4829_s18 + $0x100] sm:$0xff]  }
 0x7af   : > { %v5083_v63 = vpop.f32.mrf.mxu0  ;;  %v5085_v1 = vpop.f32.mrf.mxu1  ;;  %4076 = vmatprep.subr.bf16.mxu0 %v4412_v44  ;;  %4098 = vmatprep.subr.bf16.mxu1 %v4413_v45  ;;  %v1868_v44 = vadd.f32 %v5073_v32, %v1494_v34  ;;  %v4433_v45 = vld [vmem:[%s4829_s18 + $0x1c0] sm:$0xff]   ;;  %v2042_v49 = vmax.f32 %v1827_v43, 0.0  ;;  %v4437_v32 = vld [vmem:[%s4829_s18 + $0x2f8] sm:$0xff]   ;;  %v4458_v34 = vld [vmem:[%s4829_s18 + $0x210] sm:$0xff]  }
 0x7b0   : > { %3213 = vmatprep.mubr.bf16.mxu0 %v2315_v50  ;;  %3253 = vmatprep.mubr.bf16.mxu1 %v2317_v51  ;;  %v4435_v48 = vld [vmem:[%s4829_s18 + $0x180] sm:$0xff]  }
 0x7b1   : > { %v1910_v4 = vpop.f32.mrf.mxu0  ;;  %v1951_v6 = vpop.f32.mrf.mxu1  ;;  %v2044_v50 = vmax.f32 %v1868_v44, 0.0  ;;  %v4465_v43 = vld [vmem:[%s4829_s18 + $0x2c0] sm:$0xff]   ;;  %v4468_v44 = vld [vmem:[%s4829_s18 + $0x378] sm:$0xff]  }
 0x7b2   : > { %4077 = vmatpush3.bf16.msra.mxu0 %v4414_v52  ;;  %4099 = vmatpush3.bf16.msra.mxu1 %v4415_v53  ;;  %v1911_v46 = vadd.f32 %v1910_v4, %v1506_v38  ;;  %v1952_v62 = vadd.f32 %v1951_v6, %v1514_v39  ;;  %v4438_v53 = vld [vmem:[%s4829_s18 + $0x238] sm:$0xff]   ;;  %v4461_v38 = vld [vmem:[%s4829_s18 + $0x2c8] sm:$0xff]   ;;  %v1522_v39 = vrot.slane %v5036_v56, %v1489_v14  ;;  %v4466_v14 = vld [vmem:[%s4829_s18 + $0x200] sm:$0xff]  }
 0x7b3   : > { %v1912_v10 = vpop.f32.mrf.mxu0  ;;  %v1953_v11 = vpop.f32.mrf.mxu1  ;;  %4078 = vmatprep.subr.bf16.mxu0 %v4416_v2  ;;  %4100 = vmatprep.subr.bf16.mxu1 %v4417_v3  ;;  %v2314_v2 = vpack.c.bf16 %v2042_v49, %v2042_v49  ;;  %v2316_v3 = vpack.c.bf16 %v2044_v50, %v2044_v50  ;;  %v4439_v4 = vld [vmem:[%s4829_s18 + $0x2b8] sm:$0xff]   ;;  %v4473_v50 = vld [vmem:[%s4829_s18 + $0x3f0] sm:$0xff]  }
 0x7b4   : > { %v2047_v51 = vmax.f32 %v1911_v46, 0.0  ;;  %v2049_v52 = vmax.f32 %v1952_v62, 0.0  ;;  %v4442_v10 = vld [vmem:[%s4829_s18 + $0x230] sm:$0xff]  }
 0x7b5   : > { %v1913_v17 = vpop.f32.mrf.mxu0  ;;  %v1954_v18 = vpop.f32.mrf.mxu1  ;;  %v4443_v11 = vld [vmem:[%s4829_s18 + $0x2b0] sm:$0xff]  }
 0x7b6   : > { %4079 = vmatpush3.bf16.msra.mxu0 %v4418_v8  ;;  %4101 = vmatpush3.bf16.msra.mxu1 %v4419_v9  ;;  %v2319_v6 = vpack.c.bf16 %v2047_v51, %v2047_v51  ;;  %v4441_v8 = vld [vmem:[%s4829_s18 + $0x2f0] sm:$0xff]   ;;  %v2321_v9 = vpack.c.bf16 %v2049_v52, %v2049_v52  ;;  %v4447_v17 = vld [vmem:[%s4829_s18 + $0x2a8] sm:$0xff]   ;;  %v4448_v18 = vld [vmem:[%s4829_s18 + $0x260] sm:$0xff]  }
 0x7b7   : > { %v1990_v21 = vpop.f32.mrf.mxu0  ;;  %v2031_v22 = vpop.f32.mrf.mxu1  ;;  %4080 = vmatprep.subr.bf16.mxu0 %v4420_v13  ;;  %4102 = vmatprep.subr.bf16.mxu1 %v4421_v16  ;;  %v4444_v13 = vld [vmem:[%s4829_s18 + $0x268] sm:$0xff]   ;;  %v4475_v51 = vld [vmem:[%s4829_s18 + $0x3b0] sm:$0xff]  }
 0x7b8   : > { %v5099_v25 = vadd.f32 %v1990_v21, %v1518_v12  ;;  %v5102_v26 = vadd.f32 %v2031_v22, %v5041_v57  ;;  %v4428_v57 = vld [vmem:[%s4829_s18 + $0x148] sm:$0xff]   ;;  %v4451_v21 = vld [vmem:[%s4829_s18 + $0x2a0] sm:$0xff]   ;;  %v4452_v22 = vld [vmem:[%s4829_s18 + $0x258] sm:$0xff]  }
 0x7b9   : > { %v5104_v27 = vpop.f32.mrf.mxu0  ;;  %v5106_v28 = vpop.f32.mrf.mxu1  ;;  %v4445_v16 = vld [vmem:[%s4829_s18 + $0x2e8] sm:$0xff]  }
 0x7ba   : > { %4081 = vmatpush3.bf16.msra.mxu0 %v4422_v19  ;;  %4103 = vmatpush3.bf16.msra.mxu1 %v4423_v20  ;;  %v4446_v12 = vld [vmem:[%s4829_s18 + $0x228] sm:$0xff]   ;;  %v4449_v19 = vld [vmem:[%s4829_s18 + $0x2e0] sm:$0xff]   ;;  %v1993_v54 = vadd.f32 %v5104_v27, %v1522_v39  ;;  %v4470_v27 = vld [vmem:[%s4829_s18 + $0x338] sm:$0xff]  }
 0x7bb   : > { %v1994_v35 = vpop.f32.mrf.mxu0  ;;  %v2035_v36 = vpop.f32.mrf.mxu1  ;;  %4082 = vmatprep.subr.bf16.mxu0 %v4424_v23  ;;  %4104 = vmatprep.subr.bf16.mxu1 %v4425_v24  ;;  %v4450_v20 = vld [vmem:[%s4829_s18 + $0x220] sm:$0xff]   ;;  %v4453_v23 = vld [vmem:[%s4829_s18 + $0x2d8] sm:$0xff]   ;;  %v4476_v52 = vld [vmem:[%s4829_s18 + $0x368] sm:$0xff]  }
 0x7bc   : > { %v4454_v24 = vld [vmem:[%s4829_s18 + $0x218] sm:$0xff]   ;;  %v1502_v35 = vrot.slane %v5036_v56, %v1469_v58  ;;  %v4459_v36 = vld [vmem:[%s4829_s18 + $0x290] sm:$0xff]   ;;  %v1530_v58 = vrot.slane %v5036_v56, %v1497_v15 }
 0x7bd   : > { %v1995_v40 = vpop.f32.mrf.mxu0  ;;  %v2036_v41 = vpop.f32.mrf.mxu1 }
 0x7be   : > { %4083 = vmatpush3.bf16.msra.mxu0 %v4426_v29  ;;  %4105 = vmatpush3.bf16.msra.mxu1 %v4427_v30  ;;  %v4455_v29 = vld [vmem:[%s4829_s18 + $0x298] sm:$0xff]   ;;  %v4456_v30 = vld [vmem:[%s4829_s18 + $0x250] sm:$0xff]   ;;  %v4462_v40 = vld [vmem:[%s4829_s18 + $0x208] sm:$0xff]   ;;  %v1909_v41 = vadd.f32 %v5083_v63, %v1502_v35 }
 0x7bf   : > { %4084 = vmatprep.subr.bf16.mxu0 %v4428_v57  ;;  %4106 = vmatprep.subr.bf16.mxu1 %v4429_v37  ;;  %v4460_v57 = vld [vmem:[%s4829_s18 + $0x248] sm:$0xff]   ;;  %v1510_v37 = vrot.slane %v5036_v56, %v1477_v59  ;;  %v2034_v56 = vadd.f32 %v5106_v28, %v1530_v58  ;;  %v4467_v63 = vld [vmem:[%s4829_s18 + $0x280] sm:$0xff]   ;;  %v4471_v28 = vld [vmem:[%s4829_s18 + $0x3b8] sm:$0xff]  }
 0x7c0   : > { %v4463_v59 = vld [vmem:[%s4829_s18 + $0x288] sm:$0xff]   ;;  %v2046_v15 = vmax.f32 %v1909_v41, 0.0 }
 0x7c1   : > { %v2053_v46 = vmax.f32 %v2034_v56, 0.0 }
 0x7c2   : > { %4085 = vmatpush3.bf16.msra.mxu0 %v4430_v55  ;;  %4107 = vmatpush3.bf16.msra.mxu1 %v4431_v60  ;;  %v4464_v55 = vld [vmem:[%s4829_s18 + $0x240] sm:$0xff]   ;;  %v1950_v60 = vadd.f32 %v5085_v1, %v1510_v37  ;;  %v4469_v1 = vld [vmem:[%s4829_s18 + $0x3f8] sm:$0xff]   ;;  %v2318_v62 = vpack.c.bf16 %v2046_v15, %v2046_v15 }
 0x7c3   : > { %4086 = vmatprep.subr.bf16.mxu0 %v4432_v61  ;;  %4108 = vmatprep.subr.bf16.mxu1 %v4433_v45  ;;  %v2051_v45 = vmax.f32 %v1993_v54, 0.0  ;;  %v3858_v37 = vld [vmem:[%s780_s20] ss:$0 sm:$0xff] }
 0x7c4   : > { %v2048_v61 = vmax.f32 %v1950_v60, 0.0 }
 0x7c5   : > { %v2323_v49 = vpack.c.bf16 %v2051_v45, %v2051_v45 }
 0x7c6   : > { %4087 = vmatpush3.bf16.msra.mxu0 %v4434_v47  ;;  %4109 = vmatpush3.bf16.msra.mxu1 %v4435_v48  ;;  %v2320_v47 = vpack.c.bf16 %v2048_v61, %v2048_v61  ;;  %v4472_v48 = vld [vmem:[%s4829_s18 + $0x370] sm:$0xff]  }
 0x7c7   : > { %4116 = vmatprep.subr.bf16.mxu0 %v4436_v31  ;;  %4138 = vmatprep.subr.bf16.mxu1 %v4437_v32  ;;  %v2325_v31 = vpack.c.bf16 %v2053_v46, %v2053_v46  ;;  %v4474_v32 = vld [vmem:[%s4829_s18 + $0x330] sm:$0xff]  }
 0x7c9   : > { %3214 = vmatmul.mubr.bf16.vlgmr.msra.gmra.mxu0 %v2314_v2  ;;  %3254 = vmatmul.mubr.bf16.vlgmr.msra.gmra.mxu1 %v2316_v3  ;;  %v4478_v2 = vld [vmem:[%s4829_s18 + $0x328] sm:$0xff]  }
 0x7ca   : > { %4117 = vmatpush3.bf16.msra.mxu0 %v4438_v53  ;;  %3293 = vmatprep.mubr.bf16.mxu0 %v2319_v6  ;;  %v4477_v53 = vld [vmem:[%s4829_s18 + $0x3e8] sm:$0xff]   ;;  %v4481_v6 = vld [vmem:[%s4829_s18 + $0x3e0] sm:$0xff]  }
 0x7cb   : > { %4139 = vmatpush3.bf16.msra.mxu1 %v4439_v4  ;;  %3333 = vmatprep.mubr.bf16.mxu1 %v2321_v9  ;;  %v4479_v3 = vld [vmem:[%s4829_s18 + $0x3a8] sm:$0xff]   ;;  %v4480_v4 = vld [vmem:[%s4829_s18 + $0x360] sm:$0xff]   ;;  %v4484_v9 = vld [vmem:[%s4829_s18 + $0x358] sm:$0xff]  }
 0x7cc   : > { %4118 = vmatprep.subr.bf16.mxu0 %v4440_v7  ;;  %4140 = vmatprep.subr.bf16.mxu1 %v4441_v8  ;;  %v4482_v7 = vld [vmem:[%s4829_s18 + $0x320] sm:$0xff]  }
 0x7cd   : > { %v4483_v8 = vld [vmem:[%s4829_s18 + $0x3a0] sm:$0xff]  }
 0x7ce   : > { %4119 = vmatpush3.bf16.msra.mxu0 %v4442_v10  ;;  %v4485_v10 = vld [vmem:[%s4829_s18 + $0x3d8] sm:$0xff]  }
 0x7cf   : > { %4141 = vmatpush3.bf16.msra.mxu1 %v4443_v11  ;;  %4120 = vmatprep.subr.bf16.mxu0 %v4444_v13  ;;  %v4486_v11 = vld [vmem:[%s4829_s18 + $0x318] sm:$0xff]  }
 0x7d0   : > { %4142 = vmatprep.subr.bf16.mxu1 %v4445_v16  ;;  %v4487_v13 = vld [vmem:[%s4829_s18 + $0x398] sm:$0xff]   ;;  %v4488_v16 = vld [vmem:[%s4829_s18 + $0x350] sm:$0xff]  }
 0x7d2   : > { %4121 = vmatpush3.bf16.msra.mxu0 %v4446_v12  ;;  %v4489_v12 = vld [vmem:[%s4829_s18 + $0x3d0] sm:$0xff]  }
 0x7d3   : > { %4143 = vmatpush3.bf16.msra.mxu1 %v4447_v17  ;;  %4122 = vmatprep.subr.bf16.mxu0 %v4448_v18  ;;  %v4490_v17 = vld [vmem:[%s4829_s18 + $0x310] sm:$0xff]  }
 0x7d4   : > { %4144 = vmatprep.subr.bf16.mxu1 %v4449_v19  ;;  %v4491_v18 = vld [vmem:[%s4829_s18 + $0x390] sm:$0xff]   ;;  %v4492_v19 = vld [vmem:[%s4829_s18 + $0x348] sm:$0xff]  }
 0x7d6   : > { %4123 = vmatpush3.bf16.msra.mxu0 %v4450_v20  ;;  %v4493_v20 = vld [vmem:[%s4829_s18 + $0x3c8] sm:$0xff]  }
 0x7d7   : > { %4145 = vmatpush3.bf16.msra.mxu1 %v4451_v21  ;;  %4124 = vmatprep.subr.bf16.mxu0 %v4452_v22  ;;  %v4494_v21 = vld [vmem:[%s4829_s18 + $0x308] sm:$0xff]  }
 0x7d8   : > { %4146 = vmatprep.subr.bf16.mxu1 %v4453_v23  ;;  %v4495_v22 = vld [vmem:[%s4829_s18 + $0x388] sm:$0xff]   ;;  %v4496_v23 = vld [vmem:[%s4829_s18 + $0x340] sm:$0xff]  }
 0x7da   : > { %4125 = vmatpush3.bf16.msra.mxu0 %v4454_v24  ;;  %v4497_v24 = vld [vmem:[%s4829_s18 + $0x3c0] sm:$0xff]  }
 0x7db   : > { %4147 = vmatpush3.bf16.msra.mxu1 %v4455_v29  ;;  %4126 = vmatprep.subr.bf16.mxu0 %v4456_v30  ;;  %v4498_v29 = vld [vmem:[%s4829_s18 + $0x300] sm:$0xff]   ;;  %v2050_v30 = vmax.f32 %v5099_v25, 0.0 }
 0x7dc   : > { %4148 = vmatprep.subr.bf16.mxu1 %v4457_v33  ;;  %v4499_v33 = vld [vmem:[%s4829_s18 + $0x380] sm:$0xff]  }
 0x7dd   : > { %v2322_v35 = vpack.c.bf16 %v2050_v30, %v2050_v30  ;;  %v4500_v30 = vld [vmem:[%s797_s23 + $0x8] sm:$0xff]  }
 0x7de   : > { %4127 = vmatpush3.bf16.msra.mxu0 %v4458_v34  ;;  %v2052_v34 = vmax.f32 %v5102_v26, 0.0 }
 0x7df   : > { %4149 = vmatpush3.bf16.msra.mxu1 %v4459_v36  ;;  %4128 = vmatprep.subr.bf16.mxu0 %v4460_v57 }
 0x7e0   : > { %4150 = vmatprep.subr.bf16.mxu1 %v4461_v38  ;;  %v2324_v36 = vpack.c.bf16 %v2052_v34, %v2052_v34 }
 0x7e2   : > { %4129 = vmatpush3.bf16.msra.mxu0 %v4462_v40 }
 0x7e3   : > { %4151 = vmatpush3.bf16.msra.mxu1 %v4463_v59  ;;  %4130 = vmatprep.subr.bf16.mxu0 %v4464_v55 }
 0x7e4   : > { %4152 = vmatprep.subr.bf16.mxu1 %v4465_v43 }
 0x7e6   : > { %4131 = vmatpush3.bf16.msra.mxu0 %v4466_v14 }
 0x7e7   : > { %4153 = vmatpush3.bf16.msra.mxu1 %v4467_v63  ;;  %4160 = vmatprep.subr.bf16.mxu0 %v4468_v44 }
 0x7e8   : > { %4182 = vmatprep.subr.bf16.mxu1 %v4469_v1 }
 0x7e9   : > { %3294 = vmatmul.mubr.bf16.vlgmr.msra.gmra.mxu0 %v2318_v62 }
 0x7ea   : > { %3334 = vmatmul.mubr.bf16.vlgmr.msra.gmra.mxu1 %v2320_v47  ;;  %4161 = vmatpush3.bf16.msra.mxu0 %v4470_v27 }
 0x7eb   : > { %3373 = vmatprep.mubr.bf16.mxu0 %v2323_v49  ;;  %4183 = vmatpush3.bf16.msra.mxu1 %v4471_v28 }
 0x7ec   : > { %3413 = vmatprep.mubr.bf16.mxu1 %v2325_v31  ;;  %4162 = vmatprep.subr.bf16.mxu0 %v4472_v48 }
 0x7ed   : > { %4184 = vmatprep.subr.bf16.mxu1 %v4473_v50 }
 0x7ee   : > { %4163 = vmatpush3.bf16.msra.mxu0 %v4474_v32 }
 0x7ef   : > { %4185 = vmatpush3.bf16.msra.mxu1 %v4475_v51  ;;  %4164 = vmatprep.subr.bf16.mxu0 %v4476_v52 }
 0x7f0   : > { %4186 = vmatprep.subr.bf16.mxu1 %v4477_v53 }
 0x7f2   : > { %4165 = vmatpush3.bf16.msra.mxu0 %v4478_v2 }
 0x7f3   : > { %4187 = vmatpush3.bf16.msra.mxu1 %v4479_v3  ;;  %4166 = vmatprep.subr.bf16.mxu0 %v4480_v4 }
 0x7f4   : > { %4188 = vmatprep.subr.bf16.mxu1 %v4481_v6 }
 0x7f6   : > { %4167 = vmatpush3.bf16.msra.mxu0 %v4482_v7 }
 0x7f7   : > { %4189 = vmatpush3.bf16.msra.mxu1 %v4483_v8  ;;  %4168 = vmatprep.subr.bf16.mxu0 %v4484_v9 }
 0x7f8   : > { %4190 = vmatprep.subr.bf16.mxu1 %v4485_v10 }
 0x7fa   : > { %4169 = vmatpush3.bf16.msra.mxu0 %v4486_v11 }
 0x7fb   : > { %4191 = vmatpush3.bf16.msra.mxu1 %v4487_v13  ;;  %4170 = vmatprep.subr.bf16.mxu0 %v4488_v16 }
 0x7fc   : > { %4192 = vmatprep.subr.bf16.mxu1 %v4489_v12 }
 0x7fe   : > { %4171 = vmatpush3.bf16.msra.mxu0 %v4490_v17 }
 0x7ff   : > { %4193 = vmatpush3.bf16.msra.mxu1 %v4491_v18  ;;  %4172 = vmatprep.subr.bf16.mxu0 %v4492_v19 }
 0x800   : > { %4194 = vmatprep.subr.bf16.mxu1 %v4493_v20 }
 0x802   : > { %4173 = vmatpush3.bf16.msra.mxu0 %v4494_v21 }
 0x803   : > { %4195 = vmatpush3.bf16.msra.mxu1 %v4495_v22  ;;  %4174 = vmatprep.subr.bf16.mxu0 %v4496_v23 }
 0x804   : > { %4196 = vmatprep.subr.bf16.mxu1 %v4497_v24 }
 0x806   : > { %4175 = vmatpush3.bf16.msra.mxu0 %v4498_v29 }
 0x807   : > { %4197 = vmatpush3.bf16.msra.mxu1 %v4499_v33  ;;  %4271 = vmatprep.subr.bf16.mxu0 %v4618_v0  ;;  %v4501_v33 = vld [vmem:[%s797_s23] sm:$0xff]  }
 0x809   : > { %3374 = vmatmul.mubr.bf16.vlgmr.msra.gmra.mxu0 %v2322_v35 }
 0x80a   : > { %3414 = vmatmul.mubr.bf16.vlgmr.msra.gmra.mxu1 %v2324_v36  ;;  %4275 = vmatprep.mubr.msk.bf16.mxu0 %vm4619_vm0, %v4618_v0 }
 0x80b   : > { %4272 = vmatpush3.bf16.msra.mxu0 %v4500_v30 }
 0x80c   : > { %4273 = vmatprep.subr.bf16.mxu0 %v4618_v0 }
 0x80f   : > { %4274 = vmatpush3.bf16.msra.mxu0 %v4501_v33 }
 0x869   : > { %v4044_v25 = vpop.f32.mrf.mxu0  ;;  %v4066_v57 = vpop.f32.mrf.mxu1 }
 0x86b   : > { %v4045_v26 = vpop.f32.mrf.mxu0  ;;  %v4067_v38 = vpop.f32.mrf.mxu1 }
 0x86c   : > { %v4046_v39 = vadd.f32 %v4045_v26, %v4044_v25  ;;  %v4068_v58 = vadd.f32 %v4067_v38, %v4066_v57  ;;  %v3987_v25 = vld [vmem:[%s789_s21] ss:$0 sm:$0xff] }
 0x86d   : > { %v4047_v40 = vpop.f32.mrf.mxu0  ;;  %v4069_v41 = vpop.f32.mrf.mxu1 }
 0x86e   : > { %v3136_v59 = vadd.f32 %v4046_v39, %v3858_v37  ;;  %v3988_v37 = vld [vmem:[%s792_s15] ss:$0 sm:$0xff] }
 0x86f   : > { %v4048_v55 = vpop.f32.mrf.mxu0  ;;  %v4070_v60 = vpop.f32.mrf.mxu1 }
 0x870   : > { %v3176_v43 = vadd.f32 %v4068_v58, %v3136_v59 }
 0x889   : > { %v4088_v54 = vpop.f32.mrf.mxu0  ;;  %v4110_v56 = vpop.f32.mrf.mxu1 }
 0x88b   : > { %v4089_v14 = vpop.f32.mrf.mxu0  ;;  %v4111_v15 = vpop.f32.mrf.mxu1 }
 0x88c   : > { %v4090_v50 = vadd.f32 %v4089_v14, %v4088_v54  ;;  %v4112_v32 = vadd.f32 %v4111_v15, %v4110_v56 }
 0x88d   : > { %v4091_v63 = vpop.f32.mrf.mxu0  ;;  %v4113_v44 = vpop.f32.mrf.mxu1 }
 0x88e   : > { %v3216_v31 = vadd.f32 %v4090_v50, %v3176_v43 }
 0x88f   : > { %v4092_v61 = vpop.f32.mrf.mxu0  ;;  %v4114_v1 = vpop.f32.mrf.mxu1 }
 0x890   : > { %v3256_v52 = vadd.f32 %v4112_v32, %v3216_v31 }
 0x8a9   : > { %v4132_v45 = vpop.f32.mrf.mxu0 }
 0x8aa   : > { %v4154_v46 = vpop.f32.mrf.mxu1 }
 0x8ab   : > { %v4133_v27 = vpop.f32.mrf.mxu0 }
 0x8ac   : > { %v4155_v62 = vpop.f32.mrf.mxu1  ;;  %v4134_v51 = vadd.f32 %v4133_v27, %v4132_v45 }
 0x8ad   : > { %v4135_v28 = vpop.f32.mrf.mxu0  ;;  %v4156_v3 = vadd.f32 %v4155_v62, %v4154_v46 }
 0x8ae   : > { %v4157_v47 = vpop.f32.mrf.mxu1  ;;  %v3296_v53 = vadd.f32 %v4134_v51, %v3256_v52 }
 0x8af   : > { %v4136_v48 = vpop.f32.mrf.mxu0 }
 0x8b0   : > { %v4158_v49 = vpop.f32.mrf.mxu1  ;;  %v3336_v7 = vadd.f32 %v4156_v3, %v3296_v53 }
 0x8c9   : > { %v4176_v2 = vpop.f32.mrf.mxu0 }
 0x8ca   : > { %v4198_v4 = vpop.f32.mrf.mxu1 }
 0x8cb   : > { %v4177_v6 = vpop.f32.mrf.mxu0 }
 0x8cc   : > { %v4178_v8 = vadd.f32 %v4177_v6, %v4176_v2  ;;  %v4199_v9 = vpop.f32.mrf.mxu1 }
 0x8cd   : > { %v4179_v10 = vpop.f32.mrf.mxu0  ;;  %v4200_v13 = vadd.f32 %v4199_v9, %v4198_v4 }
 0x8ce   : > { %v3376_v11 = vadd.f32 %v4178_v8, %v3336_v7  ;;  %v4201_v16 = vpop.f32.mrf.mxu1 }
 0x8cf   : > { %v4180_v12 = vpop.f32.mrf.mxu0 }
 0x8d0   : > { %v3416_v17 = vadd.f32 %v4200_v13, %v3376_v11  ;;  %v4202_v18 = vpop.f32.mrf.mxu1 }
 0x8d2   : > { %v3421_v19 = vadd.f32 %v3416_v17, %v4951_v42 }
 0x8d4   : > { %v3424_v20 = vsel %vm826_vm1, %v3421_v19, 0.0 }
 0x8d5   : > { %3425 = vadd.xlane.f32.xlu0 %v3424_v20 }
 0x95e   : > { %v3426_v21 = vpop.xlane.xlu0 %3425 }
 0x95f   : > { %v3427_v22 = vmul.f32 0.03125, %v3426_v21 }
 0x961   : > { %v3428_v23 = vsub.f32 %v3421_v19, %v3427_v22 }
 0x963   : > { %v3429_v24 = vmul.f32 %v3428_v23, %v3428_v23 }
 0x965   : > { %v3430_v29 = vsel %vm826_vm1, %v3429_v24, 0.0 }
 0x966   : > { %3431 = vadd.xlane.f32.xlu0 %v3430_v29 }
 0x9ef   : > { %v3432_v42 = vpop.xlane.xlu0 %3431 }
 0x9f0   : > { %v3433_v34 = vmul.f32 0.03125, %v3432_v42 }
 0x9f2   : > { %v3434_v35 = vadd.f32 1e-05, %v3433_v34 }
 0x9f4   : > { %4520 = vrsqrt.f32 %v3434_v35 }
 0xa01   : > { %v4521_v36 = vpop.eup %4520 }
 0xa02   : > { %v3436_v57 = vmul.f32 %v4521_v36, %v3428_v23 }
 0xa04   : > { %v3443_v26 = vmul.f32 %v3987_v25, %v3436_v57 }
 0xa06   : > { %v3450_v0 = vadd.f32 %v3988_v37, %v3443_v26 }
 0xa08   : > { %v3455_v38 = vpack.c.bf16 %v3450_v0, %v3450_v0 }
 0xa0a   : > { %4276 = vmatmul.mubr.msk.bf16.vlgmr.msra.gmra.mxu0 %vm826_vm1, %v3455_v38 }
 0xaca   : > { %v3505_v39 = vpop.f32.mrf.mxu0 }
 0xacc   : > { %v4277_v58 = vpop.f32.mrf.mxu0  ;;  %3514 = sbr.rel (%p3992_p0) target bundleno = 2771 (0xad3), region = 96 }
 0xace   : > { %v3508_v40 = vpop.f32.mrf.mxu0 }
 0xad0   : > { %v4278_v41 = vpop.f32.mrf.mxu0 }
 0xad1   : > { %v4635_v59 = vmov 0.0  }
 0xad2   : > { %3515 = vst.msk [vmem:[#allocation2] sm:$0xff] %vm826_vm1, %v4635_v59 }
 0xad3 PF: > { %s5364_s26 = sld [smem:[#allocation9_spill]] }
 0xad9   : > { %v3516_v55 = vld [vmem:[#allocation2] sm:$0xff]  ;;  %p3993_p1 = scmp.ne.s32.totalorder %s5364_s26, 1 }
 0xada   : > { %v3517_v60 = vadd.f32 %v3516_v55, %v3505_v39  ;;  %s5365_s29 = sld [smem:[#allocation22_spill]] (!%p3993_p1) }
 0xadb   : > { %3522 = sbr.rel (%p3993_p1) target bundleno = 3101 (0xc1d), region = 100  ;;  %s5366_s20 = sld [smem:[#allocation23_spill]] (!%p3993_p1) }
 0xadc   : > { %3518 = vst.msk [vmem:[#allocation2] sm:$0xff] %vm826_vm1, %v3517_v60  ;;  %s5367_s23 = sld [smem:[#allocation24_spill]] (!%p3993_p1) }
 0xae0   : > { %v3994_v54 = vld [vmem:[%s5365_s29] ss:$0 sm:$0xff] }
 0xae2   : > { %v3996_v48 = vld [vmem:[%s5367_s23] ss:$0 sm:$0xff] }
 0xae3   : > { %v3523_v43 = vld [vmem:[#allocation2] sm:$0xff] }
 0xae4   : > { %v3524_v56 = vadd.f32 %v3523_v43, %v4838_v5  ;;  %v3995_v5 = vld [vmem:[%s5366_s20] ss:$0 sm:$0xff] }
 0xae6   : > { %v3532_v14 = vadd.f32 %v3994_v54, %v3524_v56 }
 0xae8   : > { %v3535_v15 = vsel %vm826_vm1, %v3532_v14, 0.0 }
 0xae9   : > { %3536 = vadd.xlane.f32.xlu0 %v3535_v15 }
 0xb72   : > { %v3537_v63 = vpop.xlane.xlu0 %3536 }
 0xb73   : > { %v3538_v44 = vmul.f32 0.03125, %v3537_v63 }
 0xb75   : > { %v3539_v61 = vsub.f32 %v3532_v14, %v3538_v44 }
 0xb77   : > { %v3540_v1 = vmul.f32 %v3539_v61, %v3539_v61 }
 0xb79   : > { %v3541_v45 = vsel %vm826_vm1, %v3540_v1, 0.0 }
 0xb7a   : > { %3542 = vadd.xlane.f32.xlu0 %v3541_v45 }
 0xc03   : > { %v3543_v46 = vpop.xlane.xlu0 %3542 }
 0xc04   : > { %v3544_v27 = vmul.f32 0.03125, %v3543_v46 }
 0xc06   : > { %v3545_v62 = vadd.f32 1e-05, %v3544_v27 }
 0xc08   : > { %4522 = vrsqrt.f32 %v3545_v62 }
 0xc15   : > { %v4523_v28 = vpop.eup %4522 }
 0xc16   : > { %v3547_v47 = vmul.f32 %v4523_v28, %v3539_v61 }
 0xc18   : > { %v3554_v49 = vmul.f32 %v3995_v5, %v3547_v47 }
 0xc1a   : > { %v3561_v50 = vadd.f32 %v3996_v48, %v3554_v49 }
 0xc1c   : > { %3562 = vst.msk [vmem:[%s743_s22] sm:$0xff] %vm826_vm1, %v3561_v50 }
 0xc1d PF: > { %s5368_s24 = sld [smem:[#allocation10_spill]]  ;;  %s3577_s27 = sshll.u32 %s743_s22, 4  ;;  %s3578_s27 = int_to_ptr.vmem [resolvable:$true] %s3577_s27 }
 0xc1e   : > { %s5369_s25 = sld [smem:[#allocation7_spill]]  ;;  %s4524_s30 = scalar_lea.vmem %s3578_s27, 128 }
 0xc1f   : > { %s5371_s17 = sld [smem:[#allocation25_spill]]  ;;  %p4525_p2 = scmp.ne.s32.totalorder %s3578_s27, %s4524_s30 }
 0xc20   : > { %s4636_s0 = smov [#allocation3]  }
 0xc21   : > { %p4526_p4 = pnand %p4525_p2, %p4781_p3  ;;  %s4528_s20 = sshll.u32 %s4636_s0, 4  ;;  %s4529_s20 = int_to_ptr.vmem [resolvable:$false] %s4528_s20 }
 0xc22   : > { %s4530_s18 = scalar_lea.vmem %s4529_s20, 256  ;;  %p4531_p6 = scmp.lt.s32.totalorder %s3578_s27, %s4529_s20 }
 0xc23   : > { %s3998_s1 = sshll.u32 %s5368_s24, 7  ;;  %p4527_p5 = pneg %p4526_p4 }
 0xc24   : > { %s5372_s28 = sand.u32 1, %s5369_s25   ;;  %p4532_p7 = scmp.lt.s32.totalorder %s4530_s18, %s4524_s30 }
 0xc25   : > { %s3575_s26 = scalar_lea.hbm %s5371_s17, %s3998_s1  ;;  %s3564_s29 = scalar_lea.sflag [#allocation4], %s5372_s28 }
 0xc26   : > { %p4533_p8 = por %p4532_p7, %p4531_p6 }
 0xc28   : > { %p4534_p10 = pnand %p4533_p8, %p4527_p5 }
 0xc2a   : > { %4537 = shalt.err (!%p4534_p10)
}
 0xc2b   : > { %s4538_s2 = scalar_lea.hbm %s3575_s26, 128  ;;  %s4542_s23 = scalar_lea.hbm %s5371_s17, 256 }
 0xc2c   : > { %p4539_p11 = scmp.ne.s32.totalorder %s3575_s26, %s4538_s2  ;;  %p4543_p0 = scmp.lt.s32.totalorder %s3575_s26, %s5371_s17 }
 0xc2d   : > { %p4544_p1 = scmp.lt.s32.totalorder %s4542_s23, %s4538_s2 }
 0xc2e   : > { %p4540_p12 = pnand %p4539_p11, %p4781_p3 }
 0xc2f   : > { %p4545_p2 = por %p4544_p1, %p4543_p0 }
 0xc30   : > { %p4541_p13 = pneg %p4540_p12 }
 0xc32   : > { %p4546_p4 = pnand %p4545_p2, %p4541_p13 }
 0xc34   : > { %4549 = shalt.err (!%p4546_p4)
}
 0xc35   : > { %4279 = dma.vmem_to_hbm [thread:$0]  (%p4781_p3), %s3578_s27, 128, %s3575_s26, %s3564_s29  }
 0xc36 PF: > { %s5373_s1 = sld [smem:[#allocation13_spill]] }
 0xc37   : > { %s5374_s16 = sld [smem:[#allocation6_spill]] }
 0xc3c   : > { %p4285_p5 = scmp.ge.s32.totalorder %s5373_s1, 2 }
 0xc3d   : > { %s3589_s28 = sand.u32 1, %s5374_s16  }
 0xc3e   : > { %p4282_p6 = pnand %p4285_p5, %p4791_p9  ;;  %s3590_s30 = scalar_lea.sflag [#allocation4], %s3589_s28 }
 0xc40   : > { %p4283_p7 = pneg %p4282_p6 }
 0xc42   : > { %4583 = dma.done.wait (%p4283_p7), %s3590_s30, 128  }
 0xc43   : > { %4585 = vsyncadd (%p4283_p7), %s3590_s30, 4294967168  ;;  %s31_s20 = sadd.s32 1, %s5373_s1   ;;  %s5376_s27 = sld [smem:[#allocation7_spill]] }
 0xc44   : > { %p28_p8 = scmp.ge.s32.totalorder %s31_s20, 6   ;;  %s5377_s28 = sld [smem:[#allocation8_spill]] }
 0xc45   : > { %s5378_s29 = sld [smem:[#allocation18_spill]] }
 0xc46   : > { %s5379_s30 = sld [smem:[#allocation11_spill]]  ;;  %30 = sbr.rel (!%p28_p8) target bundleno = 13 (0xd), region = 174 }
 0xc47   : > { %s5380_s0 = sld [smem:[#allocation12_spill]] }
 0xc48   : > { %s5381_s19 = sld [smem:[#allocation14_spill]] }
 0xc49   : > { %s5382_s1 = sld [smem:[#allocation16_spill]] }
 0xc4b   :  { %3595 = vsyncpa [#allocation4], 1 }
 0xc4c   :  { %3597 = vsyncpa [#allocation4 + $0x1], 1 }

</bundles_post_ra>
